<compile_context>
chip_gen: v7x
topology: tpu7x:2x2x1
jax: 0.10.0
libtpu: 0.0.40
codegen_flags: <defaults>
</compile_context>

<pallas_src>
import functools

import jax
import jax.numpy as jnp
from jax.experimental import pallas as pl
from jax.experimental.pallas import tpu as pltpu


def _round_up(x, m):
    return ((x + m - 1) // m) * m


def _autoencoder_kernel(n_repr, n_rot,
                        x_ref, side_ref,
                        w1_ref, b1_ref, w2_ref, b2_ref,
                        w3_ref, b3_ref, w4_ref, b4_ref,
                        out_ref, enc_ref):
    f32 = jnp.float32
    bf16 = jnp.bfloat16
    n_t = 2 * n_rot

    # ----- encoder MLP (bf16 MXU operands, f32 accumulation) -----
    h1 = jnp.dot(x_ref[...].astype(bf16), w1_ref[...],
                 preferred_element_type=f32) + b1_ref[...]
    h1 = jnp.maximum(h1, 0.0)
    enc = jnp.dot(h1.astype(bf16), w2_ref[...],
                  preferred_element_type=f32) + b2_ref[...]
    enc_ref[...] = enc                  # lane-dense (128-wide) unmasked store

    # ----- variational split + reparametrize (f32 VPU/EUP) -----
    side = side_ref[...]                # merged [eps | dz | zero pad]
    eps = side[:, :n_repr]
    mu = enc[:, :n_repr]
    logvar = enc[:, n_repr:2 * n_repr]
    h = mu + jnp.exp(0.5 * logvar) * eps

    # TODO(synk): spherical=True path (F.normalize of the transform slice) is
    # not implemented; this covers variational=True, intervene=True,
    # spherical=False.

    # ----- group action: per-pair 2D rotations by angles dz -----
    # Latent layout here is de-interleaved: [x-coords | y-coords | tail].
    # Register-only: no scratch, no masked column stores.
    if n_rot > 0:
        dz = side[:, n_repr:n_repr + n_rot]
        c = jnp.cos(dz)
        s = jnp.sin(dz)
        hx = h[:, :n_rot]
        hy = h[:, n_rot:n_t]
        parts = [c * hx - s * hy, s * hx + c * hy]
        if n_repr > n_t:
            parts.append(h[:, n_t:])    # tail units pass through unchanged
        h_rot = jnp.concatenate(parts, axis=-1)
    else:
        h_rot = h

    # ----- decoder MLP -----
    d1 = jnp.dot(h_rot.astype(bf16), w3_ref[...],
                 preferred_element_type=f32) + b3_ref[...]
    d1 = jnp.maximum(d1, 0.0)
    out_ref[...] = jnp.dot(d1.astype(bf16), w4_ref[...],
                           preferred_element_type=f32) + b4_ref[...]


def _choose_batch_tile(B, d_in, side_w, enc_w):
    """Pick a batch tile: big enough to fill the MXU M-dim / amortize per-step
    overhead, small enough for v5e's 16 MiB scoped-VMEM default, and giving
    >=2 grid steps when possible (v7x megacore)."""
    # f32 bytes per batch row across all batch-tiled, double-buffered operands
    # (x in, side in, out, enc out).
    row_bytes = 2 * 4 * (d_in + side_w + d_in + enc_w)
    budget = 12 * 1024 * 1024          # headroom under the 16 MiB v5e default
    tb_cap = max(8, (budget // row_bytes) // 8 * 8)
    tb = 256                           # MXU M-dim sweet spot on v6e/v7x
    if B < 2 * tb:
        # Small / medium batch: split into (at least) two tiles.
        tb = max(8, _round_up(-(-B // 2), 8))
    return min(tb, tb_cap)


def autoencoder_forward(x_nchw, dz, eps, params, n_repr, n_rot):
    """AutoEncoder forward pass. Returns (x_rec_nchw, mu, logvar)."""
    B, C, H, W = x_nchw.shape
    d_in = C * H * W
    n_t = 2 * n_rot
    x_flat = x_nchw.reshape(B, d_in).astype(jnp.float32)

    w1, b1, w2, b2, w3, b3, w4, b4 = params
    hidden = w1.shape[1]
    enc_w = _round_up(2 * n_repr, 128)       # lane-dense encoder output width
    side_w = _round_up(n_repr + n_rot, 128)  # merged eps|dz side-input width

    # De-interleave permutation of the latent coordinates:
    # original [x0, y0, x1, y1, ..., tail] -> [x0, x1, ..., y0, y1, ..., tail]
    perm_list = ([2 * k for k in range(n_rot)]
                 + [2 * k + 1 for k in range(n_rot)]
                 + list(range(n_t, n_repr)))
    inv_list = [0] * n_repr
    for new_pos, old_pos in enumerate(perm_list):
        inv_list[old_pos] = new_pos
    perm = jnp.asarray(perm_list, jnp.int32)
    inv_perm = jnp.asarray(inv_list, jnp.int32)

    # Wrapper-side layout plumbing (one-time XLA ops): permute latent columns,
    # zero-pad the encoder head to 128 lanes, cast matmul weights to bf16.
    # Biases stay f32 (added after f32 accumulation).
    w2p = jnp.concatenate([w2[:, :n_repr][:, perm], w2[:, n_repr:][:, perm]],
                          axis=1)
    b2p = jnp.concatenate([b2[:, :n_repr][:, perm], b2[:, n_repr:][:, perm]],
                          axis=1)
    w2p = jnp.pad(w2p, ((0, 0), (0, enc_w - 2 * n_repr)))
    b2p = jnp.pad(b2p, ((0, 0), (0, enc_w - 2 * n_repr)))
    w3p = w3[perm, :]
    eps_p = eps[:, perm].astype(jnp.float32)

    w1b = w1.astype(jnp.bfloat16)
    w2b = w2p.astype(jnp.bfloat16)
    w3b = w3p.astype(jnp.bfloat16)
    w4b = w4.astype(jnp.bfloat16)

    # Batch tiling with zero padding (outputs sliced back to B below).
    tb = _choose_batch_tile(B, d_in, side_w, enc_w)
    Bp = _round_up(B, tb)
    grid = (Bp // tb,)

    # Single lane-dense side input: [eps (permuted) | dz | zero pad].
    side = jnp.concatenate([eps_p, dz.astype(jnp.float32)], axis=1)
    side = jnp.pad(side, ((0, Bp - B), (0, side_w - (n_repr + n_rot))))
    x_pad = jnp.pad(x_flat, ((0, Bp - B), (0, 0)))

    row = lambda i: (i, 0)   # batch-tiled operands
    rep = lambda i: (0, 0)   # VMEM-resident weights/biases (same block each step)

    def wspec(shape):
        # Constant block index -> single buffer is enough (saves VMEM on v7x).
        return pl.BlockSpec(shape, rep, pipeline_mode=pl.Buffered(1))

    in_specs = [
        pl.BlockSpec((tb, d_in), row),
        pl.BlockSpec((tb, side_w), row),
        wspec((d_in, hidden)),
        wspec((1, hidden)),
        wspec((hidden, enc_w)),
        wspec((1, enc_w)),
        wspec((n_repr, hidden)),
        wspec((1, hidden)),
        wspec((hidden, d_in)),
        wspec((1, d_in)),
    ]
    out_specs = (
        pl.BlockSpec((tb, d_in), row),
        pl.BlockSpec((tb, enc_w), row),
    )
    out_shapes = (
        jax.ShapeDtypeStruct((Bp, d_in), jnp.float32),    # decoder output (flat)
        jax.ShapeDtypeStruct((Bp, enc_w), jnp.float32),   # [mu | logvar] (perm, padded)
    )

    flops = 2 * Bp * (d_in * hidden + hidden * enc_w
                      + n_repr * hidden + hidden * d_in)
    transcendentals = Bp * (n_repr + 2 * n_rot)
    bytes_accessed = (
        2 * (d_in * hidden + hidden * enc_w + n_repr * hidden + hidden * d_in)
        + 4 * (2 * hidden + enc_w + d_in)
        + 4 * Bp * (d_in + side_w)
        + 4 * Bp * (d_in + enc_w))

    out_flat, enc_p = pl.pallas_call(
        functools.partial(_autoencoder_kernel, n_repr, n_rot),
        grid=grid,
        in_specs=in_specs,
        out_specs=out_specs,
        out_shape=out_shapes,
        compiler_params=pltpu.CompilerParams(dimension_semantics=("parallel",)),
        cost_estimate=pl.CostEstimate(flops=flops,
                                      transcendentals=transcendentals,
                                      bytes_accessed=bytes_accessed),
    )(x_pad, side, w1b, b1, w2b, b2p, w3b, b3, w4b, b4)

    mu = enc_p[:B, :n_repr][:, inv_perm]
    logvar = enc_p[:B, n_repr:2 * n_repr][:, inv_perm]
    return out_flat[:B].reshape(B, C, H, W), mu, logvar


def _reference_forward(x_nchw, dz, eps, params, n_repr, n_rot,
                       matmul_dtype=jnp.float32):
    """Pure-JAX reference; matmul operands cast to `matmul_dtype`, f32 accum."""
    B = x_nchw.shape[0]
    w1, b1, w2, b2, w3, b3, w4, b4 = params

    def mm(a, w):
        return jnp.dot(a.astype(matmul_dtype), w.astype(matmul_dtype),
                       preferred_element_type=jnp.float32)

    x = x_nchw.reshape(B, -1).astype(jnp.float32)
    h1 = jnp.maximum(mm(x, w1) + b1, 0.0)
    enc = mm(h1, w2) + b2
    mu, logvar = enc[:, :n_repr], enc[:, n_repr:]
    h = mu + jnp.exp(0.5 * logvar) * eps
    ht = h[:, :2 * n_rot].reshape(B, n_rot, 2)
    c, s = jnp.cos(dz), jnp.sin(dz)
    r0 = c * ht[..., 0] - s * ht[..., 1]
    r1 = s * ht[..., 0] + c * ht[..., 1]
    rot = jnp.stack([r0, r1], axis=-1).reshape(B, 2 * n_rot)
    h = jnp.concatenate([rot, h[:, 2 * n_rot:]], axis=1)
    d1 = jnp.maximum(mm(h, w3) + b3, 0.0)
    out = mm(d1, w4) + b4
    return out.reshape(x_nchw.shape), mu, logvar


if __name__ == "__main__":
    # Small synthetic shapes.  B=16 gives a 2-step batch grid (tb=8) so the
    # resident-weight pipelining and the parallel batch axis are exercised.
    B, C, H, W = 16, 4, 16, 16
    d_in = C * H * W            # 1024
    hidden = 128
    n_repr = 8                  # n_repr_units
    n_rot = 2                   # -> n_transform_units = 4

    key = jax.random.PRNGKey(0)
    kx, kdz, keps, k1, k2, k3, k4, k5, k6, k7, k8 = jax.random.split(key, 11)

    x = jax.random.normal(kx, (B, C, H, W), jnp.float32)
    dz = jax.random.uniform(kdz, (B, n_rot), jnp.float32, -1.0, 1.0)  # angles
    eps = jax.random.normal(keps, (B, n_repr), jnp.float32)           # reparam noise

    scale = 0.05
    params = (
        scale * jax.random.normal(k1, (d_in, hidden), jnp.float32),
        scale * jax.random.normal(k2, (1, hidden), jnp.float32),
        scale * jax.random.normal(k3, (hidden, 2 * n_repr), jnp.float32),
        scale * jax.random.normal(k4, (1, 2 * n_repr), jnp.float32),
        scale * jax.random.normal(k5, (n_repr, hidden), jnp.float32),
        scale * jax.random.normal(k6, (1, hidden), jnp.float32),
        scale * jax.random.normal(k7, (hidden, d_in), jnp.float32),
        scale * jax.random.normal(k8, (1, d_in), jnp.float32),
    )

    out, mu, logvar = autoencoder_forward(x, dz, eps, params, n_repr, n_rot)
    jax.block_until_ready((out, mu, logvar))

    assert out.shape == (B, C, H, W)
    assert mu.shape == (B, n_repr) and logvar.shape == (B, n_repr)

    # Tight check against a reference using the same bf16-MXU arithmetic.
    rb_out, rb_mu, rb_lv = _reference_forward(x, dz, eps, params, n_repr, n_rot,
                                              matmul_dtype=jnp.bfloat16)
    assert jnp.allclose(out, rb_out, atol=5e-3, rtol=5e-3)
    assert jnp.allclose(mu, rb_mu, atol=2e-3, rtol=2e-3)
    assert jnp.allclose(logvar, rb_lv, atol=2e-3, rtol=2e-3)

    # Loose semantic check against the full-f32 reference.
    rf_out, rf_mu, rf_lv = _reference_forward(x, dz, eps, params, n_repr, n_rot,
                                              matmul_dtype=jnp.float32)
    assert jnp.allclose(out, rf_out, atol=5e-2, rtol=5e-2)
    assert jnp.allclose(mu, rf_mu, atol=5e-2, rtol=5e-2)
    assert jnp.allclose(logvar, rf_lv, atol=5e-2, rtol=5e-2)

    print("KERNEL_OK")
</pallas_src>

<mosaic_0001>
module attributes {stable_mosaic.version = 11 : i64} {
  func.func @_autoencoder_kernel(%arg0: i32, %arg1: memref<8x1024xf32, #tpu.memory_space<vmem>>, %arg2: memref<8x128xf32, #tpu.memory_space<vmem>>, %arg3: memref<1024x128xbf16, #tpu.memory_space<vmem>>, %arg4: memref<1x128xf32, #tpu.memory_space<vmem>>, %arg5: memref<128x128xbf16, #tpu.memory_space<vmem>>, %arg6: memref<1x128xf32, #tpu.memory_space<vmem>>, %arg7: memref<8x128xbf16, #tpu.memory_space<vmem>>, %arg8: memref<1x128xf32, #tpu.memory_space<vmem>>, %arg9: memref<128x1024xbf16, #tpu.memory_space<vmem>>, %arg10: memref<1x1024xf32, #tpu.memory_space<vmem>>, %arg11: memref<8x1024xf32, #tpu.memory_space<vmem>>, %arg12: memref<8x128xf32, #tpu.memory_space<vmem>>) attributes {dimension_semantics = [#tpu.dimension_semantics<parallel>], iteration_bounds = array<i64: 2>, scalar_prefetch = 0 : i64, scratch_operands = 0 : i64, tpu.core_type = #tpu.core_type<tc>, window_params = [{transform_indices = @transform_0, window_bounds = array<i64: 8, 1024>}, {transform_indices = @transform_1, window_bounds = array<i64: 8, 128>}, {pipeline_mode = #tpu.pipeline_mode<synchronous>, transform_indices = @transform_2, window_bounds = array<i64: 1024, 128>}, {pipeline_mode = #tpu.pipeline_mode<synchronous>, transform_indices = @transform_3, window_bounds = array<i64: 1, 128>}, {pipeline_mode = #tpu.pipeline_mode<synchronous>, transform_indices = @transform_4, window_bounds = array<i64: 128, 128>}, {pipeline_mode = #tpu.pipeline_mode<synchronous>, transform_indices = @transform_5, window_bounds = array<i64: 1, 128>}, {pipeline_mode = #tpu.pipeline_mode<synchronous>, transform_indices = @transform_6, window_bounds = array<i64: 8, 128>}, {pipeline_mode = #tpu.pipeline_mode<synchronous>, transform_indices = @transform_7, window_bounds = array<i64: 1, 128>}, {pipeline_mode = #tpu.pipeline_mode<synchronous>, transform_indices = @transform_8, window_bounds = array<i64: 128, 1024>}, {pipeline_mode = #tpu.pipeline_mode<synchronous>, transform_indices = @transform_9, window_bounds = array<i64: 1, 1024>}, {transform_indices = @transform_10, window_bounds = array<i64: 8, 1024>}, {transform_indices = @transform_11, window_bounds = array<i64: 8, 128>}]} {
    %c0 = arith.constant 0 : index
    %c0_0 = arith.constant 0 : index
    %0 = vector.load %arg1[%c0, %c0_0] : memref<8x1024xf32, #tpu.memory_space<vmem>>, vector<8x1024xf32>
    %1 = arith.truncf %0 : vector<8x1024xf32> to vector<8x1024xbf16>
    %c0_1 = arith.constant 0 : index
    %c0_2 = arith.constant 0 : index
    %2 = vector.load %arg3[%c0_1, %c0_2] : memref<1024x128xbf16, #tpu.memory_space<vmem>>, vector<1024x128xbf16>
    %cst = arith.constant dense<0.000000e+00> : vector<8x128xf32>
    %3 = tpu.matmul %1, %2, %cst {dimension_numbers = #tpu.dot_dimension_numbers<[1], [0], [0], [1], [0, 0, 1, 1], [], []>} : vector<8x1024xbf16>, vector<1024x128xbf16>, vector<8x128xf32> -> vector<8x128xf32>
    %c0_3 = arith.constant 0 : index
    %c0_4 = arith.constant 0 : index
    %4 = vector.load %arg4[%c0_3, %c0_4] : memref<1x128xf32, #tpu.memory_space<vmem>>, vector<1x128xf32>
    %5 = vector.broadcast %4 : vector<1x128xf32> to vector<8x128xf32>
    %6 = arith.addf %3, %5 : vector<8x128xf32>
    %cst_5 = arith.constant 0.000000e+00 : f32
    %7 = vector.broadcast %cst_5 : f32 to vector<8x128xf32>
    %8 = arith.maximumf %6, %7 : vector<8x128xf32>
    %9 = arith.truncf %8 : vector<8x128xf32> to vector<8x128xbf16>
    %c0_6 = arith.constant 0 : index
    %c0_7 = arith.constant 0 : index
    %10 = vector.load %arg5[%c0_6, %c0_7] : memref<128x128xbf16, #tpu.memory_space<vmem>>, vector<128x128xbf16>
    %cst_8 = arith.constant dense<0.000000e+00> : vector<8x128xf32>
    %11 = tpu.matmul %9, %10, %cst_8 {dimension_numbers = #tpu.dot_dimension_numbers<[1], [0], [0], [1], [0, 0, 1, 1], [], []>} : vector<8x128xbf16>, vector<128x128xbf16>, vector<8x128xf32> -> vector<8x128xf32>
    %c0_9 = arith.constant 0 : index
    %c0_10 = arith.constant 0 : index
    %12 = vector.load %arg6[%c0_9, %c0_10] : memref<1x128xf32, #tpu.memory_space<vmem>>, vector<1x128xf32>
    %13 = vector.broadcast %12 : vector<1x128xf32> to vector<8x128xf32>
    %14 = arith.addf %11, %13 : vector<8x128xf32>
    %c0_11 = arith.constant 0 : index
    %c0_12 = arith.constant 0 : index
    %15 = vector.load %arg12[%c0_11, %c0_12] : memref<8x128xf32, #tpu.memory_space<vmem>>, vector<8x128xf32>
    tpu.vector_store %arg12[%c0_11, %c0_12], %14 {strides = array<i32>} : memref<8x128xf32, #tpu.memory_space<vmem>>, vector<8x128xf32>,
    %c0_13 = arith.constant 0 : index
    %c0_14 = arith.constant 0 : index
    %16 = vector.load %arg2[%c0_13, %c0_14] : memref<8x128xf32, #tpu.memory_space<vmem>>, vector<8x128xf32>
    %17 = vector.extract_strided_slice %16 {offsets = [0, 0], sizes = [8, 8], strides = [1, 1]} : vector<8x128xf32> to vector<8x8xf32>
    %18 = vector.extract_strided_slice %14 {offsets = [0, 0], sizes = [8, 8], strides = [1, 1]} : vector<8x128xf32> to vector<8x8xf32>
    %19 = vector.extract_strided_slice %14 {offsets = [0, 8], sizes = [8, 8], strides = [1, 1]} : vector<8x128xf32> to vector<8x8xf32>
    %cst_15 = arith.constant 5.000000e-01 : f32
    %20 = vector.broadcast %cst_15 : f32 to vector<8x8xf32>
    %21 = arith.mulf %20, %19 : vector<8x8xf32>
    %22 = math.exp %21 : vector<8x8xf32>
    %23 = arith.mulf %22, %17 : vector<8x8xf32>
    %24 = arith.addf %18, %23 : vector<8x8xf32>
    %25 = vector.extract_strided_slice %16 {offsets = [0, 8], sizes = [8, 2], strides = [1, 1]} : vector<8x128xf32> to vector<8x2xf32>
    %26 = math.cos %25 : vector<8x2xf32>
    %27 = math.sin %25 : vector<8x2xf32>
    %28 = vector.extract_strided_slice %24 {offsets = [0, 0], sizes = [8, 2], strides = [1, 1]} : vector<8x8xf32> to vector<8x2xf32>
    %29 = vector.extract_strided_slice %24 {offsets = [0, 2], sizes = [8, 2], strides = [1, 1]} : vector<8x8xf32> to vector<8x2xf32>
    %30 = arith.mulf %26, %28 : vector<8x2xf32>
    %31 = arith.mulf %27, %29 : vector<8x2xf32>
    %32 = arith.subf %30, %31 : vector<8x2xf32>
    %33 = arith.mulf %27, %28 : vector<8x2xf32>
    %34 = arith.mulf %26, %29 : vector<8x2xf32>
    %35 = arith.addf %33, %34 : vector<8x2xf32>
    %36 = vector.extract_strided_slice %24 {offsets = [0, 4], sizes = [8, 4], strides = [1, 1]} : vector<8x8xf32> to vector<8x4xf32>
    %37 = tpu.concatenate %32, %35, %36 in 1 : vector<8x2xf32>, vector<8x2xf32>, vector<8x4xf32> -> vector<8x8xf32>
    %38 = arith.truncf %37 : vector<8x8xf32> to vector<8x8xbf16>
    %c0_16 = arith.constant 0 : index
    %c0_17 = arith.constant 0 : index
    %39 = vector.load %arg7[%c0_16, %c0_17] : memref<8x128xbf16, #tpu.memory_space<vmem>>, vector<8x128xbf16>
    %cst_18 = arith.constant dense<0.000000e+00> : vector<8x128xf32>
    %40 = tpu.matmul %38, %39, %cst_18 {dimension_numbers = #tpu.dot_dimension_numbers<[1], [0], [0], [1], [0, 0, 1, 1], [], []>} : vector<8x8xbf16>, vector<8x128xbf16>, vector<8x128xf32> -> vector<8x128xf32>
    %c0_19 = arith.constant 0 : index
    %c0_20 = arith.constant 0 : index
    %41 = vector.load %arg8[%c0_19, %c0_20] : memref<1x128xf32, #tpu.memory_space<vmem>>, vector<1x128xf32>
    %42 = vector.broadcast %41 : vector<1x128xf32> to vector<8x128xf32>
    %43 = arith.addf %40, %42 : vector<8x128xf32>
    %cst_21 = arith.constant 0.000000e+00 : f32
    %44 = vector.broadcast %cst_21 : f32 to vector<8x128xf32>
    %45 = arith.maximumf %43, %44 : vector<8x128xf32>
    %46 = arith.truncf %45 : vector<8x128xf32> to vector<8x128xbf16>
    %c0_22 = arith.constant 0 : index
    %c0_23 = arith.constant 0 : index
    %47 = vector.load %arg9[%c0_22, %c0_23] : memref<128x1024xbf16, #tpu.memory_space<vmem>>, vector<128x1024xbf16>
    %cst_24 = arith.constant dense<0.000000e+00> : vector<8x1024xf32>
    %48 = tpu.matmul %46, %47, %cst_24 {dimension_numbers = #tpu.dot_dimension_numbers<[1], [0], [0], [1], [0, 0, 1, 1], [], []>} : vector<8x128xbf16>, vector<128x1024xbf16>, vector<8x1024xf32> -> vector<8x1024xf32>
    %c0_25 = arith.constant 0 : index
    %c0_26 = arith.constant 0 : index
    %49 = vector.load %arg10[%c0_25, %c0_26] : memref<1x1024xf32, #tpu.memory_space<vmem>>, vector<1x1024xf32>
    %50 = vector.broadcast %49 : vector<1x1024xf32> to vector<8x1024xf32>
    %51 = arith.addf %48, %50 : vector<8x1024xf32>
    %c0_27 = arith.constant 0 : index
    %c0_28 = arith.constant 0 : index
    %52 = vector.load %arg11[%c0_27, %c0_28] : memref<8x1024xf32, #tpu.memory_space<vmem>>, vector<8x1024xf32>
    tpu.vector_store %arg11[%c0_27, %c0_28], %51 {strides = array<i32>} : memref<8x1024xf32, #tpu.memory_space<vmem>>, vector<8x1024xf32>,
    return
  }
  func.func @transform_0(%arg0: i32) -> (i32, i32) {
    %c0_i32 = arith.constant 0 : i32
    %c0_i32_0 = arith.constant 0 : i32
    return %arg0, %c0_i32 : i32, i32
  }
  func.func @transform_1(%arg0: i32) -> (i32, i32) {
    %c0_i32 = arith.constant 0 : i32
    %c0_i32_0 = arith.constant 0 : i32
    return %arg0, %c0_i32 : i32, i32
  }
  func.func @transform_2(%arg0: i32) -> (i32, i32) {
    %c0_i32 = arith.constant 0 : i32
    %c0_i32_0 = arith.constant 0 : i32
    %c0_i32_1 = arith.constant 0 : i32
    return %c0_i32, %c0_i32_0 : i32, i32
  }
  func.func @transform_3(%arg0: i32) -> (i32, i32) {
    %c0_i32 = arith.constant 0 : i32
    %c0_i32_0 = arith.constant 0 : i32
    %c0_i32_1 = arith.constant 0 : i32
    return %c0_i32, %c0_i32_0 : i32, i32
  }
  func.func @transform_4(%arg0: i32) -> (i32, i32) {
    %c0_i32 = arith.constant 0 : i32
    %c0_i32_0 = arith.constant 0 : i32
    %c0_i32_1 = arith.constant 0 : i32
    return %c0_i32, %c0_i32_0 : i32, i32
  }
  func.func @transform_5(%arg0: i32) -> (i32, i32) {
    %c0_i32 = arith.constant 0 : i32
    %c0_i32_0 = arith.constant 0 : i32
    %c0_i32_1 = arith.constant 0 : i32
    return %c0_i32, %c0_i32_0 : i32, i32
  }
  func.func @transform_6(%arg0: i32) -> (i32, i32) {
    %c0_i32 = arith.constant 0 : i32
    %c0_i32_0 = arith.constant 0 : i32
    %c0_i32_1 = arith.constant 0 : i32
    return %c0_i32, %c0_i32_0 : i32, i32
  }
  func.func @transform_7(%arg0: i32) -> (i32, i32) {
    %c0_i32 = arith.constant 0 : i32
    %c0_i32_0 = arith.constant 0 : i32
    %c0_i32_1 = arith.constant 0 : i32
    return %c0_i32, %c0_i32_0 : i32, i32
  }
  func.func @transform_8(%arg0: i32) -> (i32, i32) {
    %c0_i32 = arith.constant 0 : i32
    %c0_i32_0 = arith.constant 0 : i32
    %c0_i32_1 = arith.constant 0 : i32
    return %c0_i32, %c0_i32_0 : i32, i32
  }
  func.func @transform_9(%arg0: i32) -> (i32, i32) {
    %c0_i32 = arith.constant 0 : i32
    %c0_i32_0 = arith.constant 0 : i32
    %c0_i32_1 = arith.constant 0 : i32
    return %c0_i32, %c0_i32_0 : i32, i32
  }
  func.func @transform_10(%arg0: i32) -> (i32, i32) {
    %c0_i32 = arith.constant 0 : i32
    %c0_i32_0 = arith.constant 0 : i32
    return %arg0, %c0_i32 : i32, i32
  }
  func.func @transform_11(%arg0: i32) -> (i32, i32) {
    %c0_i32 = arith.constant 0 : i32
    %c0_i32_0 = arith.constant 0 : i32
    return %arg0, %c0_i32 : i32, i32
  }
}

</mosaic_0001>

<bundles_post_ra>
// kernel: tpu_custom_call.1
= control target key start
LH: loop header
LB: loop body
LE: loop exit
PB: predicated region body
PF: predicated region fallthrough
CT: control target
= control target key end

     0   :  { %s3653_s0 = inlined_call_operand.hbm [shape: f32[16,1024], index: 0, kind: input, shape index: {}]   ;;  %s3654_s1 = inlined_call_operand.hbm [shape: f32[16,128], index: 1, kind: input, shape index: {}]   ;;  %s3655_s2 = inlined_call_operand.hbm [shape: bf16[1024,128], index: 2, kind: input, shape index: {}]   ;;  %s3656_s3 = inlined_call_operand.vmem [shape: f32[1,128], index: 3, kind: input, shape index: {}]   ;;  %s3657_s4 = inlined_call_operand.hbm [shape: bf16[128,128], index: 4, kind: input, shape index: {}]   ;;  %s3658_s5 = inlined_call_operand.vmem [shape: f32[1,128], index: 5, kind: input, shape index: {}]   ;;  %s3659_s6 = inlined_call_operand.vmem [shape: bf16[8,128], index: 6, kind: input, shape index: {}]   ;;  %s3660_s7 = inlined_call_operand.vmem [shape: f32[1,128], index: 7, kind: input, shape index: {}]   ;;  %s3661_s8 = inlined_call_operand.hbm [shape: bf16[128,1024], index: 8, kind: input, shape index: {}]   ;;  %s3662_s9 = inlined_call_operand.vmem [shape: f32[1,1024], index: 9, kind: input, shape index: {}]   ;;  %s3663_s10 = inlined_call_operand.hbm [shape: f32[16,1024], index: 10, kind: output, shape index: {0}]   ;;  %s3664_s11 = inlined_call_operand.hbm [shape: f32[16,128], index: 11, kind: output, shape index: {1}]  }
   0x1   :  { %3673 = sst [smem:[#allocation22_spill]] %s3653_s0 }
   0x2   :  { %3674 = sst [smem:[#allocation23_spill]] %s3655_s2 }
   0x3   :  { %3675 = sst [smem:[#allocation24_spill]] %s3662_s9 }
   0x4   :  { %3676 = sst [smem:[#allocation25_spill]] %s3663_s10 }
   0x5   :  { %3677 = sst [smem:[#allocation26_spill]] %s3664_s11 }
   0x6   :  { %17 = vsyncpa [#allocation3], 0 }
   0x7   :  { %19 = vsyncpa [#allocation3 + $0x1], 0 }
   0x8   :  { %20 = vsyncpa [#allocation6], 0 }
   0x9   :  { %22 = vsyncpa [#allocation6 + $0x1], 0 }
   0xa   :  { %23 = vsyncpa [#allocation9], 0 }
   0xb   :  { %24 = vsyncpa [#allocation4], 0 }
   0xc   :  { %26 = vsyncpa [#allocation4 + $0x1], 0 }
   0xd   :  { %27 = vsyncpa [#allocation13], 0 }
   0xe   :  { %29 = vsyncpa [#allocation13 + $0x1], 0  ;;  %s3220_s17 = smov 0   ;;  %s3222_s18 = smov 0  }
   0xf   :  { %s3224_s19 = smov 0   ;;  %s3226_s20 = smov 0  }
  0x10 LB: > { %3678 = sst [smem:[#allocation20_spill]] %s3122_s17  ;;  %s3241_s21 = sadd.s32 4294967295, %s3134_s20   ;;  %s3134_s20 = sphi %s3226_s20, %s3709_s20   ;;  %s3130_s19 = sphi %s3224_s19, %s3708_s19   ;;  %s3126_s18 = sphi %s3222_s18, %s3707_s18   ;;  %s3122_s17 = sphi %s3220_s17, %s3706_s17  }
  0x11   : > { %s2393_s22 = sadd.s32 4294967294, %s3134_s20   ;;  %p55_p0 = scmp.ne.s32.totalorder %s3126_s18, %s3122_s17 }
  0x12   : > { %p3666_p1 = scmp.eq.s32.totalorder %s3241_s21, 0  ;;  %p279_p3 = scmp.eq.s32.totalorder %s2393_s22, 1 }
  0x13   : > { %p2394_p5 = scmp.ge.s32.totalorder %s3134_s20, 1  ;;  %p312_p7 = scmp.lt.s32.totalorder %s3134_s20, 3 }
  0x14   : > { %p3250_p4 = por %p3666_p1, %p55_p0  ;;  %p3255_p6 = por %p279_p3, %p55_p0 }
  0x15   : > { %p3260_p8 = pnand %p2394_p5, %p312_p7  ;;  %s3136_s26 = smov [#allocation7]  }
  0x16   : > { %s3679_s23 = scalar_select %p3250_p4, 1, 0 }
  0x17   : > { %s3680_s24 = scalar_select %p3255_p6, 1, 0 }
  0x18   : > { %s3682_s25 = scalar_select %p3260_p8, 1, 0 }
  0x19   : > { %3681 = sst [smem:[#allocation21_spill]] %s3680_s24  ;;  %s324_s27 = sshll.u32 %s3136_s26, 4  ;;  %s3264_s27 = int_to_ptr.vmem [resolvable:$true] %s324_s27 }
  0x1a   : > { %p2718_p9 = pneg %p3260_p8  ;;  %s3137_s29 = smov [#allocation8]  }
  0x1b   : > { %s340_s30 = sshll.u32 %s3137_s29, 4  ;;  %s3138_s12 = smov [#allocation10]   ;;  %s3275_s30 = int_to_ptr.vmem [resolvable:$true] %s340_s30 }
  0x1c   : > { %p3271_p11 = pnand %p2718_p9, %p3666_p1  ;;  %s3277_s13 = sshll.u32 %s3138_s12, 4  ;;  %s363_s13 = int_to_ptr.vmem [resolvable:$true] %s3277_s13 }
  0x1d   : > { %s3684_s2 = sld [smem:[#allocation23_spill]] }
  0x1e   : > { %p3287_p13 = pneg %p3271_p11 }
  0x23   : > { %s2880_s16 = scalar_lea.hbm %s3684_s2, 8192 }
  0x24   : > { %p2881_p12 = scmp.ne.s32.totalorder %s3684_s2, %s2880_s16  ;;  %p2887_p5 = scmp.lt.u32.totalorder %s2880_s16, %s3684_s2 }
  0x26   : > { %p2883_p0 = pnand %p3287_p13, %p2881_p12 }
  0x28   : > { %p2884_p3 = pneg %p2883_p0 }
  0x2a   : > { %p2889_p7 = pnand %p2887_p5, %p2884_p3 }
  0x2c   : > { %2892 = shalt.err (!%p2889_p7)
}
  0x2d   : > { %s2893_s14 = scalar_lea.vmem %s3264_s27, 8192  ;;  %p2901_p2 = scmp.lt.s32.totalorder %s3264_s27, %s3264_s27 }
  0x2e   : > { %p2894_p9 = scmp.ne.s32.totalorder %s3264_s27, %s2893_s14  ;;  %p2902_p6 = scmp.lt.s32.totalorder %s2893_s14, %s2893_s14 }
  0x30   : > { %p2896_p10 = pnand %p2894_p9, %p3287_p13  ;;  %p2903_p12 = por %p2902_p6, %p2901_p2 }
  0x32   : > { %p2897_p1 = pneg %p2896_p10 }
  0x34   : > { %p2904_p0 = pnand %p2903_p12, %p2897_p1 }
  0x36   : > { %2907 = shalt.err (!%p2904_p0)
}
  0x37   : > { %s3139_s15 = smov 64   ;;  %s3140_s16 = smov 4  }
  0x38   : > { %2721 = dma.hbm_to_vmem [thread:$0]  (!%p3271_p11), %s3684_s2, 8192, %s3264_s27, [#allocation6], %s3139_s15, %s3139_s15, %s3140_s16  }
  0x39   : > { %s2908_s17 = scalar_lea.hbm %s3657_s4, 1024 }
  0x3a   : > { %p2909_p2 = scmp.ne.s32.totalorder %s3657_s4, %s2908_s17  ;;  %p2915_p10 = scmp.lt.u32.totalorder %s2908_s17, %s3657_s4 }
  0x3c   : > { %p2911_p1 = pnand %p2909_p2, %p3287_p13 }
  0x3e   : > { %p2912_p6 = pneg %p2911_p1 }
  0x40   : > { %p2917_p3 = pnand %p2915_p10, %p2912_p6 }
  0x42   : > { %2920 = shalt.err (!%p2917_p3)
}
  0x43   : > { %s2921_s27 = scalar_lea.vmem %s3275_s30, 1024  ;;  %p2929_p12 = scmp.lt.s32.totalorder %s3275_s30, %s3275_s30 }
  0x44   : > { %p2922_p5 = scmp.ne.s32.totalorder %s3275_s30, %s2921_s27  ;;  %p2930_p0 = scmp.lt.s32.totalorder %s2921_s27, %s2921_s27 }
  0x46   : > { %p2924_p7 = pnand %p2922_p5, %p3287_p13  ;;  %p2931_p2 = por %p2930_p0, %p2929_p12 }
  0x48   : > { %p2925_p9 = pneg %p2924_p7 }
  0x4a   : > { %p2932_p1 = pnand %p2931_p2, %p2925_p9 }
  0x4c   : > { %2935 = shalt.err (!%p2932_p1)
}
  0x4d   : > { %2724 = dma.hbm_to_vmem [thread:$0]  (!%p3271_p11), %s3657_s4, 1024, %s3275_s30, [#allocation9], %s3139_s15, %s3139_s15, %s3140_s16  }
  0x4e   : > { %s2936_s22 = scalar_lea.hbm %s3661_s8, 8192 }
  0x4f   : > { %p2937_p6 = scmp.ne.s32.totalorder %s3661_s8, %s2936_s22  ;;  %p2943_p5 = scmp.lt.u32.totalorder %s2936_s22, %s3661_s8 }
  0x51   : > { %p2939_p10 = pnand %p2937_p6, %p3287_p13 }
  0x53   : > { %p2940_p3 = pneg %p2939_p10 }
  0x55   : > { %p2945_p7 = pnand %p2943_p5, %p2940_p3 }
  0x57   : > { %2948 = shalt.err (!%p2945_p7)
}
  0x58   : > { %s2949_s27 = scalar_lea.vmem %s363_s13, 8192  ;;  %p2957_p2 = scmp.lt.s32.totalorder %s363_s13, %s363_s13 }
  0x59   : > { %p2950_p9 = scmp.ne.s32.totalorder %s363_s13, %s2949_s27  ;;  %p2958_p1 = scmp.lt.s32.totalorder %s2949_s27, %s2949_s27 }
  0x5b   : > { %p2952_p12 = pnand %p2950_p9, %p3287_p13  ;;  %p2959_p4 = por %p2958_p1, %p2957_p2 }
  0x5d   : > { %p2953_p0 = pneg %p2952_p12 }
  0x5f   : > { %p2960_p8 = pnand %p2959_p4, %p2953_p0 }
  0x61   : > { %2963 = shalt.err (!%p2960_p8)
}
  0x62   : > { %s3141_s30 = smov 512   ;;  %s3142_s24 = smov 32  }
  0x63   : > { %2727 = dma.hbm_to_vmem [thread:$0]  (!%p3271_p11), %s3661_s8, 8192, %s363_s13, [#allocation9], %s3141_s30, %s3141_s30, %s3142_s24  }
  0x64   : > { %s3351_s9 = sadd.s32 1, %s3134_s20   ;;  %s42_s11 = sadd.s32 1, %s3130_s19 }
  0x65   : > { %s39_s10 = ssub.s32 %s3134_s20, %s3351_s9  ;;  %p49_p8 = scmp.ne.s32.totalorder %s3130_s19, %s3126_s18 }
  0x66   : > { %p40_p4 = scmp.eq.s32.totalorder %s39_s10, 0  ;;  %p50_p13 = scmp.eq.s32.totalorder %s3134_s20, 0 }
  0x67   : > { %p2745_p6 = scmp.lt.s32.totalorder %s3134_s20, 2  ;;  %p3686_p3 = scmp.eq.s32.totalorder %s3241_s21, 1 }
  0x68   : > { %s3361_s17 = scalar_select %p40_p4, %s3130_s19, %s42_s11  }
  0x69   : > { %p51_p10 = por %p50_p13, %p49_p8  ;;  %p3365_p5 = por %p3686_p3, %p49_p8 }
  0x6a   : > { %s3370_s22 = sand.u32 1, %s3130_s19   ;;  %s2567_s13 = sshll.u32 %s3134_s20, 10 }
  0x6b   : > { %s3687_s28 = scalar_select %p3365_p5, 1, 0 }
  0x6c   : > { %s2399_s26 = sshll.u32 %s3370_s22, 6  ;;  %s3688_s0 = sld [smem:[#allocation22_spill]] }
  0x6d   : > { %s383_s27 = scalar_lea.vmem [#allocation2], %s2399_s26  ;;  %p3379_p11 = pnand %p2745_p6, %p51_p10 }
  0x6e   : > { %s391_s30 = sshll.u32 %s383_s27, 4  ;;  %s380_s16 = scalar_lea.sflag [#allocation3], %s3370_s22  ;;  %s3383_s30 = int_to_ptr.vmem [resolvable:$true] %s391_s30 }
  0x6f   : > { %p2966_p9 = pneg %p3379_p11 }
  0x72   : > { %s3377_s14 = scalar_lea.hbm %s3688_s0, %s2567_s13  ;;  %s2969_s26 = scalar_lea.hbm %s3688_s0, 2048 }
  0x73   : > { %s2964_s10 = scalar_lea.hbm %s3377_s14, 1024  ;;  %p2970_p2 = scmp.lt.u32.totalorder %s3377_s14, %s3688_s0 }
  0x74   : > { %p2965_p7 = scmp.ne.s32.totalorder %s3377_s14, %s2964_s10  ;;  %p2971_p1 = scmp.lt.u32.totalorder %s2969_s26, %s2964_s10 }
  0x75   : > { %p2973_p8 = scmp.lt.u32.totalorder %s2964_s10, %s3377_s14 }
  0x76   : > { %p2967_p12 = pnand %p2966_p9, %p2965_p7  ;;  %p2972_p4 = por %p2971_p1, %p2970_p2 }
  0x78   : > { %p2968_p0 = pneg %p2967_p12  ;;  %p2974_p13 = por %p2973_p8, %p2972_p4 }
  0x7a   : > { %p2975_p6 = pnand %p2974_p13, %p2968_p0 }
  0x7c   : > { %2978 = shalt.err (!%p2975_p6)
}
  0x7d   : > { %s2979_s27 = scalar_lea.vmem %s3383_s30, 1024  ;;  %s3143_s11 = smov [#allocation2]  }
  0x7e   : > { %p2980_p10 = scmp.ne.s32.totalorder %s3383_s30, %s2979_s27  ;;  %s2984_s13 = sshll.u32 %s3143_s11, 4  ;;  %s2985_s13 = int_to_ptr.vmem [resolvable:$false] %s2984_s13 }
  0x7f   : > { %s2986_s29 = scalar_lea.vmem %s2985_s13, 2048  ;;  %p2987_p12 = scmp.lt.s32.totalorder %s3383_s30, %s2985_s13 }
  0x80   : > { %p2982_p3 = pnand %p2980_p10, %p2966_p9  ;;  %p2988_p2 = scmp.lt.s32.totalorder %s2986_s29, %s2979_s27 }
  0x82   : > { %p2983_p7 = pneg %p2982_p3  ;;  %p2989_p1 = por %p2988_p2, %p2987_p12 }
  0x84   : > { %p2990_p4 = pnand %p2989_p1, %p2983_p7 }
  0x86   : > { %2993 = shalt.err (!%p2990_p4)
}
  0x87   : > { %2731 = dma.hbm_to_vmem [thread:$0]  (!%p3379_p11), %s3377_s14, 1024, %s3383_s30, %s380_s16  }
  0x88   : > { %s2402_s10 = sshll.u32 %s3370_s22, 3  ;;  %s2403_s26 = sshll.u32 %s3134_s20, 7 }
  0x89   : > { %s3417_s15 = scalar_lea.hbm %s3654_s1, %s2403_s26  ;;  %s402_s27 = scalar_lea.vmem [#allocation5], %s2402_s10 }
  0x8a   : > { %s409_s13 = sshll.u32 %s402_s27, 4  ;;  %s3690_s29 = sand.u32 1, %s3134_s20   ;;  %s410_s13 = int_to_ptr.vmem [resolvable:$true] %s409_s13 }
  0x8b   : > { %s399_s0 = scalar_lea.sflag [#allocation6], %s3690_s29  ;;  %s2994_s2 = scalar_lea.hbm %s3417_s15, 128 }
  0x8c   : > { %p2995_p0 = scmp.ne.s32.totalorder %s3417_s15, %s2994_s2  ;;  %s2999_s30 = scalar_lea.hbm %s3654_s1, 256 }
  0x8d   : > { %p3000_p6 = scmp.lt.u32.totalorder %s3417_s15, %s3654_s1  ;;  %p3001_p10 = scmp.lt.u32.totalorder %s2999_s30, %s2994_s2 }
  0x8e   : > { %p2997_p8 = pnand %p2995_p0, %p2966_p9  ;;  %p3003_p7 = scmp.lt.u32.totalorder %s2994_s2, %s3417_s15 }
  0x8f   : > { %p3002_p3 = por %p3001_p10, %p3000_p6 }
  0x90   : > { %p2998_p13 = pneg %p2997_p8 }
  0x91   : > { %p3004_p12 = por %p3003_p7, %p3002_p3 }
  0x93   : > { %p3005_p2 = pnand %p3004_p12, %p2998_p13 }
  0x95   : > { %3008 = shalt.err (!%p3005_p2)
}
  0x96   : > { %s3009_s10 = scalar_lea.vmem %s410_s13, 128  ;;  %s3144_s12 = smov [#allocation5]  }
  0x97   : > { %p3010_p1 = scmp.ne.s32.totalorder %s410_s13, %s3009_s10  ;;  %s3014_s11 = sshll.u32 %s3144_s12, 4  ;;  %s3015_s11 = int_to_ptr.vmem [resolvable:$false] %s3014_s11 }
  0x98   : > { %s3016_s27 = scalar_lea.vmem %s3015_s11, 256  ;;  %p3017_p8 = scmp.lt.s32.totalorder %s410_s13, %s3015_s11 }
  0x99   : > { %p3012_p4 = pnand %p3010_p1, %p2966_p9  ;;  %p3018_p5 = scmp.lt.s32.totalorder %s3016_s27, %s3009_s10 }
  0x9b   : > { %p3013_p0 = pneg %p3012_p4  ;;  %p3019_p6 = por %p3018_p5, %p3017_p8 }
  0x9d   : > { %p3020_p10 = pnand %p3019_p6, %p3013_p0 }
  0x9f   : > { %3023 = shalt.err (!%p3020_p10)
}
  0xa0   : > { %2734 = dma.hbm_to_vmem [thread:$0]  (!%p3379_p11), %s3417_s15, 128, %s410_s13, %s399_s0  }
  0xa1   : > { %p3691_p13 = scmp.ne.s32.totalorder %s3682_s25, 0 }
  0xa2   : > { %s3443_s2 = sand.u32 (!%p3691_p13), 1, %s3126_s18   ;;  %p3692_p5 = scmp.ne.s32.totalorder (!%p3691_p13), %s3679_s23, 0 }
  0xa3   : > { %418 = sbr.rel (%p3691_p13) target bundleno = 1539 (0x603), region = 60  ;;  %s2405_s29 = sshll.u32 (!%p3691_p13), %s3443_s2, 6 }
  0xa4   : > { %s421_s22 = scalar_lea.sflag (!%p3691_p13), [#allocation3], %s3443_s2  ;;  %s3449_s14 = scalar_lea.vmem (!%p3691_p13), [#allocation2], %s2405_s29 }
  0xaa   : > { %3097 = dma.done.wait (%p3692_p5), %s421_s22, 1024  }
  0xab   : > { %3099 = vsyncadd (%p3692_p5), %s421_s22, 4294966272  ;;  %s429_s0 = sand.u32 1, %s3241_s21   ;;  %s2406_s25 = sshll.u32 %s3443_s2, 3 }
  0xac   : > { %s430_s24 = scalar_lea.sflag [#allocation6], %s429_s0  ;;  %s3459_s15 = scalar_lea.vmem [#allocation5], %s2406_s25 }
  0xad   : > { %3101 = dma.done.wait (%p3692_p5), %s430_s24, 128  }
  0xae   : > { %3103 = vsyncadd (%p3692_p5), %s430_s24, 4294967168  ;;  %p3693_p11 = scmp.eq.s32.totalorder %s3241_s21, 0 }
  0xb0   : > { %3105 = dma.done.wait (%p3693_p11), [#allocation6], 8192   ;;  %p3694_p9 = pmov %p3693_p11 }
  0xb2   : > { %3107 = vsyncadd (%p3694_p9), [#allocation6], 4294959104  ;;  %p3695_p3 = pmov %p3694_p9 }
  0xb4   : > { %3109 = dma.done.wait (%p3695_p3), [#allocation9], 9216   ;;  %p3696_p7 = pmov %p3695_p3 }
  0xb5   : > { %v2802_v0 = vld [vmem:[#allocation7 + $0x40] sm:$0xff]   ;;  %v2806_v4 = vld [vmem:[#allocation7 + $0x48] sm:$0xff]   ;;  %v2810_v8 = vld [vmem:[#allocation7 + $0x50] sm:$0xff]   ;;  %vm3146_vm0 = vmmov 0   ;;  %s3147_s23 = smov 8   ;;  %s3496_s10 = scalar_lea.vmem [#allocation12], %s2406_s25 }
  0xb6   : > { %3111 = vsyncadd (%p3696_p7), [#allocation9], 4294958080  ;;  %v2803_v1 = vld [vmem:[#allocation7 + $0xc0] sm:$0xff]   ;;  %2569 = vmatprep.subr.bf16.mxu0 %v2802_v0  ;;  %v2807_v5 = vld [vmem:[#allocation7 + $0xc8] sm:$0xff]   ;;  %s3148_s12 = smov 120   ;;  %vm1563_vm6 = vcmask 1043456  }
  0xb7   : > { %v2804_v2 = vld [vmem:[#allocation7] sm:$0xff]   ;;  %2591 = vmatprep.subr.bf16.mxu1 %v2803_v1  ;;  %v2808_v6 = vld [vmem:[#allocation7 + $0x8] sm:$0xff]   ;;  %v2811_v9 = vld [vmem:[#allocation7 + $0xd0] sm:$0xff]   ;;  %s3155_s22 = smov 6   ;;  %s2564_s24 = sshll.u32 %s3241_s21, 7 }
  0xb8   : > { %v2805_v3 = vld [vmem:[#allocation7 + $0x80] sm:$0xff]   ;;  %2570 = vmatpush3.bf16.msra.mxu0 %v2804_v2  ;;  %v2809_v7 = vld [vmem:[#allocation7 + $0x88] sm:$0xff]   ;;  %v2812_v10 = vld [vmem:[#allocation7 + $0x10] sm:$0xff]   ;;  %s3697_s30 = sld [smem:[#allocation26_spill]]  ;;  %s2213_s26 = scalar_lea.sflag [#allocation13], %s3443_s2 }
  0xb9   : > { %2592 = vmatpush3.bf16.msra.mxu1 %v2805_v3  ;;  %2571 = vmatprep.subr.bf16.mxu0 %v2806_v4  ;;  %v2813_v11 = vld [vmem:[#allocation7 + $0x90] sm:$0xff]   ;;  %v2814_v12 = vld [vmem:[#allocation7 + $0x58] sm:$0xff]   ;;  %v2818_v16 = vld [vmem:[#allocation7 + $0x60] sm:$0xff]   ;;  %p3698_p2 = scmp.ne.s32.totalorder %s3687_s28, 0  ;;  %s3158_s11 = smov [#allocation12]  }
  0xba   : > { %2593 = vmatprep.subr.bf16.mxu1 %v2807_v5  ;;  %v2815_v13 = vld [vmem:[#allocation7 + $0xd8] sm:$0xff]   ;;  %v2819_v17 = vld [vmem:[#allocation7 + $0xe0] sm:$0xff]   ;;  %v2822_v20 = vld [vmem:[#allocation7 + $0x68] sm:$0xff]   ;;  %s3028_s27 = sshll.u32 %s3158_s11, 4  ;;  %s3029_s27 = int_to_ptr.vmem [resolvable:$false] %s3028_s27 }
  0xbb   : > { %v2816_v14 = vld [vmem:[#allocation7 + $0x18] sm:$0xff]   ;;  %v2820_v18 = vld [vmem:[#allocation7 + $0x20] sm:$0xff]   ;;  %v2823_v21 = vld [vmem:[#allocation7 + $0xe8] sm:$0xff]  }
  0xbc   : > { %2572 = vmatpush3.bf16.msra.mxu0 %v2808_v6  ;;  %v2817_v15 = vld [vmem:[#allocation7 + $0x98] sm:$0xff]   ;;  %v2821_v19 = vld [vmem:[#allocation7 + $0xa0] sm:$0xff]   ;;  %v2824_v22 = vld [vmem:[#allocation7 + $0x28] sm:$0xff]  }
  0xbd   : > { %2594 = vmatpush3.bf16.msra.mxu1 %v2809_v7  ;;  %2573 = vmatprep.subr.bf16.mxu0 %v2810_v8  ;;  %v2825_v23 = vld [vmem:[#allocation7 + $0xa8] sm:$0xff]   ;;  %v2826_v24 = vld [vmem:[#allocation7 + $0x70] sm:$0xff]   ;;  %v2830_v28 = vld [vmem:[#allocation7 + $0x78] sm:$0xff]  }
  0xbe   : > { %2595 = vmatprep.subr.bf16.mxu1 %v2811_v9  ;;  %v2827_v25 = vld [vmem:[#allocation7 + $0xf0] sm:$0xff]   ;;  %v2831_v29 = vld [vmem:[#allocation7 + $0xf8] sm:$0xff]   ;;  %v498_v33 = vld [vmem:[%s3449_s14 + $0x18] sm:$0xff]  ;;  %s3569_s16 = scalar_lea.hbm %s3697_s30, %s2564_s24 }
  0xbf   : > { %v2828_v26 = vld [vmem:[#allocation7 + $0x30] sm:$0xff]   ;;  %v2832_v30 = vld [vmem:[#allocation7 + $0x38] sm:$0xff]   ;;  %v506_v36 = vpack.c.bf16 %v498_v33, %v498_v33  ;;  %v497_v38 = vld [vmem:[%s3449_s14 + $0x10] sm:$0xff] }
  0xc0   : > { %2574 = vmatpush3.bf16.msra.mxu0 %v2812_v10  ;;  %v2829_v27 = vld [vmem:[#allocation7 + $0xb0] sm:$0xff]   ;;  %v2833_v31 = vld [vmem:[#allocation7 + $0xb8] sm:$0xff]   ;;  %v505_v39 = vpack.c.bf16 %v497_v38, %v497_v38  ;;  %v2834_v40 = vld [vmem:[#allocation7 + $0x140] sm:$0xff]  }
  0xc1   : > { %2596 = vmatpush3.bf16.msra.mxu1 %v2813_v11  ;;  %2575 = vmatprep.subr.bf16.mxu0 %v2814_v12  ;;  %v496_v32 = vld [vmem:[%s3449_s14 + $0x8] sm:$0xff]  ;;  %v495_v34 = vld [vmem:[%s3449_s14] sm:$0xff]  ;;  %v2835_v41 = vld [vmem:[#allocation7 + $0x1c0] sm:$0xff]  }
  0xc2   : > { %2597 = vmatprep.subr.bf16.mxu1 %v2815_v13  ;;  %v504_v35 = vpack.c.bf16 %v496_v32, %v496_v32  ;;  %v503_v37 = vpack.c.bf16 %v495_v34, %v495_v34  ;;  %1102 = vmatprep.mubr.bf16.mxu1 %v506_v36  ;;  %v2836_v42 = vld [vmem:[#allocation7 + $0x100] sm:$0xff]   ;;  %v2838_v44 = vld [vmem:[#allocation7 + $0x148] sm:$0xff]   ;;  %v2842_v48 = vld [vmem:[#allocation7 + $0x150] sm:$0xff]  }
  0xc3   : > { %v2837_v43 = vld [vmem:[#allocation7 + $0x180] sm:$0xff]   ;;  %v2839_v45 = vld [vmem:[#allocation7 + $0x1c8] sm:$0xff]   ;;  %v2843_v49 = vld [vmem:[#allocation7 + $0x1d0] sm:$0xff]  }
  0xc4   : > { %2576 = vmatpush3.bf16.msra.mxu0 %v2816_v14  ;;  %1062 = vmatprep.mubr.bf16.mxu0 %v504_v35  ;;  %v2840_v46 = vld [vmem:[#allocation7 + $0x108] sm:$0xff]   ;;  %v2844_v50 = vld [vmem:[#allocation7 + $0x110] sm:$0xff]   ;;  %v2846_v52 = vld [vmem:[#allocation7 + $0x158] sm:$0xff]  }
  0xc5   : > { %2598 = vmatpush3.bf16.msra.mxu1 %v2817_v15  ;;  %2577 = vmatprep.subr.bf16.mxu0 %v2818_v16  ;;  %v2841_v47 = vld [vmem:[#allocation7 + $0x188] sm:$0xff]   ;;  %v2845_v51 = vld [vmem:[#allocation7 + $0x190] sm:$0xff]   ;;  %v2847_v53 = vld [vmem:[#allocation7 + $0x1d8] sm:$0xff]  }
  0xc6   : > { %2599 = vmatprep.subr.bf16.mxu1 %v2819_v17  ;;  %v2848_v54 = vld [vmem:[#allocation7 + $0x118] sm:$0xff]   ;;  %v2850_v56 = vld [vmem:[#allocation7 + $0x160] sm:$0xff]   ;;  %v2854_v60 = vld [vmem:[#allocation7 + $0x168] sm:$0xff]   ;;  %v3145_v17 = vmov 0.0  }
  0xc7   : > { %v2849_v55 = vld [vmem:[#allocation7 + $0x198] sm:$0xff]   ;;  %v2851_v57 = vld [vmem:[#allocation7 + $0x1e0] sm:$0xff]   ;;  %v2855_v61 = vld [vmem:[#allocation7 + $0x1e8] sm:$0xff]  }
  0xc8   : > { %2578 = vmatpush3.bf16.msra.mxu0 %v2820_v18  ;;  %v2852_v58 = vld [vmem:[#allocation7 + $0x120] sm:$0xff]   ;;  %v2856_v62 = vld [vmem:[#allocation7 + $0x128] sm:$0xff]   ;;  %v2858_v0 = vld [vmem:[#allocation7 + $0x170] sm:$0xff]  }
  0xc9   : > { %2600 = vmatpush3.bf16.msra.mxu1 %v2821_v19  ;;  %2579 = vmatprep.subr.bf16.mxu0 %v2822_v20  ;;  %v2853_v59 = vld [vmem:[#allocation7 + $0x1a0] sm:$0xff]   ;;  %v2857_v63 = vld [vmem:[#allocation7 + $0x1a8] sm:$0xff]   ;;  %v2859_v1 = vld [vmem:[#allocation7 + $0x1f0] sm:$0xff]  }
  0xca   : > { %2601 = vmatprep.subr.bf16.mxu1 %v2823_v21  ;;  %v2860_v2 = vld [vmem:[#allocation7 + $0x130] sm:$0xff]   ;;  %v2862_v4 = vld [vmem:[#allocation7 + $0x178] sm:$0xff]   ;;  %v502_v9 = vld [vmem:[%s3449_s14 + $0x38] sm:$0xff] }
  0xcb   : > { %v2861_v3 = vld [vmem:[#allocation7 + $0x1b0] sm:$0xff]   ;;  %v2863_v5 = vld [vmem:[#allocation7 + $0x1f8] sm:$0xff]   ;;  %v510_v11 = vpack.c.bf16 %v502_v9, %v502_v9  ;;  %v501_v13 = vld [vmem:[%s3449_s14 + $0x30] sm:$0xff]  ;;  %v3150_v9 = vmov 920167782  }
  0xcc   : > { %2580 = vmatpush3.bf16.msra.mxu0 %v2824_v22  ;;  %v2864_v6 = vld [vmem:[#allocation7 + $0x138] sm:$0xff]   ;;  %v499_v12 = vld [vmem:[%s3449_s14 + $0x20] sm:$0xff]  ;;  %v509_v15 = vpack.c.bf16 %v501_v13, %v501_v13  ;;  %v2866_v16 = vld [vmem:[#allocation8] sm:$0xff]  }
  0xcd   : > { %2602 = vmatpush3.bf16.msra.mxu1 %v2825_v23  ;;  %2581 = vmatprep.subr.bf16.mxu0 %v2826_v24  ;;  %v2865_v7 = vld [vmem:[#allocation7 + $0x1b8] sm:$0xff]   ;;  %v507_v14 = vpack.c.bf16 %v499_v12, %v499_v12  ;;  %v2867_v18 = vld [vmem:[#allocation8 + $0x8] sm:$0xff]   ;;  %v2868_v19 = vld [vmem:[#allocation8 + $0x10] sm:$0xff]  }
  0xce   : > { %2603 = vmatprep.subr.bf16.mxu1 %v2827_v25  ;;  %v500_v8 = vld [vmem:[%s3449_s14 + $0x28] sm:$0xff]  ;;  %v2870_v21 = vld [vmem:[#allocation8 + $0x20] sm:$0xff]   ;;  %v2871_v22 = vld [vmem:[#allocation8 + $0x28] sm:$0xff]   ;;  %s3156_s14 = smov 122  }
  0xcf   : > { %v508_v10 = vpack.c.bf16 %v500_v8, %v500_v8  ;;  %v2869_v20 = vld [vmem:[#allocation8 + $0x18] sm:$0xff]   ;;  %v2872_v23 = vld [vmem:[#allocation8 + $0x30] sm:$0xff]  }
  0xd0   : > { %2582 = vmatpush3.bf16.msra.mxu0 %v2828_v26  ;;  %v2873_v24 = vld [vmem:[#allocation8 + $0x38] sm:$0xff]  }
  0xd1   : > { %2604 = vmatpush3.bf16.msra.mxu1 %v2829_v27  ;;  %2583 = vmatprep.subr.bf16.mxu0 %v2830_v28  ;;  %v3482_v25 = vld [vmem:[%s3459_s15] sm:$0xff]  ;;  %s2240_s15 = sshll.u32 %s3496_s10, 4  ;;  %s2241_s15 = int_to_ptr.vmem [resolvable:$true] %s2240_s15 }
  0xd2   : > { %2605 = vmatprep.subr.bf16.mxu1 %v2831_v29  ;;  %1309 = vrot.lane.b32.xlu0 %v3482_v25, %s3147_s23  ;;  %v2412_v28 = vld [vmem:[%s3656_s3] ss:$0 sm:$0xff]  ;;  %v1318_v12 = vand.u32 2147483647, %v3482_v25  ;;  %vm1320_vm9 = vcmp.lt.s32.totalorder %v3482_v25, 0  ;;  %p3031_p0 = scmp.lt.s32.totalorder %s2241_s15, %s3029_s27 }
  0xd4   : > { %2584 = vmatpush3.bf16.msra.mxu0 %v2832_v30  ;;  %vm1319_vm10 = vcmp.le.f32.partialorder %v1318_v12, 0.7853982 }
  0xd5   : > { %2606 = vmatpush3.bf16.msra.mxu1 %v2833_v31  ;;  %2613 = vmatprep.subr.bf16.mxu0 %v2834_v40 }
  0xd6   : > { %2635 = vmatprep.subr.bf16.mxu1 %v2835_v41 }
  0xd7   : > { %1063 = vmatmul.mubr.bf16.vlgmr.msra.gmra.mrb[0].mxu0 %v503_v37 }
  0xd8   : > { %1103 = vmatmul.mubr.bf16.vlgmr.msra.gmra.mrb[0].mxu1 %v505_v39  ;;  %2614 = vmatpush3.bf16.msra.mxu0 %v2836_v42 }
  0xd9   : > { %2636 = vmatpush3.bf16.msra.mxu1 %v2837_v43  ;;  %2615 = vmatprep.subr.bf16.mxu0 %v2838_v44 }
  0xda   : > { %2637 = vmatprep.subr.bf16.mxu1 %v2839_v45  ;;  %1142 = vmatprep.mubr.bf16.mxu0 %v508_v10 }
  0xdb   : > { %1182 = vmatprep.mubr.bf16.mxu1 %v510_v11 }
  0xdc   : > { %2616 = vmatpush3.bf16.msra.mxu0 %v2840_v46 }
  0xdd   : > { %2638 = vmatpush3.bf16.msra.mxu1 %v2841_v47  ;;  %2617 = vmatprep.subr.bf16.mxu0 %v2842_v48 }
  0xde   : > { %2639 = vmatprep.subr.bf16.mxu1 %v2843_v49 }
  0xe0   : > { %2618 = vmatpush3.bf16.msra.mxu0 %v2844_v50 }
  0xe1   : > { %2640 = vmatpush3.bf16.msra.mxu1 %v2845_v51  ;;  %2619 = vmatprep.subr.bf16.mxu0 %v2846_v52 }
  0xe2   : > { %2641 = vmatprep.subr.bf16.mxu1 %v2847_v53  ;;  %v2477_v53 = vld [vmem:[%s3658_s5] ss:$0 sm:$0xff] }
  0xe4   : > { %2620 = vmatpush3.bf16.msra.mxu0 %v2848_v54 }
  0xe5   : > { %2642 = vmatpush3.bf16.msra.mxu1 %v2849_v55  ;;  %2621 = vmatprep.subr.bf16.mxu0 %v2850_v56 }
  0xe6   : > { %2643 = vmatprep.subr.bf16.mxu1 %v2851_v57 }
  0xe8   : > { %2622 = vmatpush3.bf16.msra.mxu0 %v2852_v58 }
  0xe9   : > { %2644 = vmatpush3.bf16.msra.mxu1 %v2853_v59  ;;  %2623 = vmatprep.subr.bf16.mxu0 %v2854_v60 }
  0xea   : > { %2645 = vmatprep.subr.bf16.mxu1 %v2855_v61 }
  0xec   : > { %2624 = vmatpush3.bf16.msra.mxu0 %v2856_v62 }
  0xed   : > { %2646 = vmatpush3.bf16.msra.mxu1 %v2857_v63  ;;  %2625 = vmatprep.subr.bf16.mxu0 %v2858_v0  ;;  %v1321_v0 = vand.u32 2139095040, %v3482_v25 }
  0xee   : > { %2647 = vmatprep.subr.bf16.mxu1 %v2859_v1 }
  0xef   : > { %v1322_v1 = vshrl.u32 %v1321_v0, 23 }
  0xf0   : > { %2626 = vmatpush3.bf16.msra.mxu0 %v2860_v2 }
  0xf1   : > { %2648 = vmatpush3.bf16.msra.mxu1 %v2861_v3  ;;  %2627 = vmatprep.subr.bf16.mxu0 %v2862_v4  ;;  %v2486_v2 = vadd.s32 4294967169, %v1322_v1 }
  0xf2   : > { %2649 = vmatprep.subr.bf16.mxu1 %v2863_v5 }
  0xf3   : > { %v1328_v3 = vadd.s32 1, %v2486_v2 }
  0xf4   : > { %2628 = vmatpush3.bf16.msra.mxu0 %v2864_v6 }
  0xf5   : > { %2650 = vmatpush3.bf16.msra.mxu1 %v2865_v7  ;;  %2668 = vmatprep.subr.bf16.mxu0 %v3145_v17  ;;  %vm1329_vm1 = vcmp.gt.s32.totalorder %v1328_v3, 0  ;;  %v3149_v7 = vmov 2102212464  }
  0xf6   : > { %2688 = vmatprep.subr.bf16.mxu1 %v3145_v17  ;;  %v1330_v4 = vsel %vm1329_vm1, %v1328_v3, 0  ;;  %vm1410_vm1 = vweird.f32 %v3482_v25 }
  0xf7   : > { %1143 = vmatmul.mubr.bf16.vlgmr.msra.gmra.mrb[4].mxu0 %v507_v14  ;;  %v1332_v5 = vand.u32 31, %v1330_v4  ;;  %v1331_v11 = vshrl.u32 %v1330_v4, 5  ;;  %v3151_v14 = vmov 1326507024  }
  0xf8   : > { %1183 = vmatmul.mubr.bf16.vlgmr.msra.gmra.mrb[4].mxu1 %v509_v15  ;;  %2669 = vmatpush3.bf16.msra.mxu0 %v2866_v16  ;;  %v3152_v16 = vmov 683565275  }
  0xf9   : > { %2670 = vmatprep.subr.bf16.mxu0 %v3145_v17  ;;  %2684 = vmatprep.mubr.msk.bf16.mxu0 %vm3146_vm0, %v3145_v17  ;;  %v1333_v6 = vsub.s32 32, %v1332_v5  ;;  %v1344_v8 = vshll.u32 %v3149_v7, %v1332_v5  ;;  %v1347_v13 = vshll.u32 %v3150_v9, %v1332_v5  ;;  %vm1353_vm2 = vcmp.lt.s32.totalorder %v1331_v11, 4 }
  0xfa   : > { %2690 = vmatprep.mubr.msk.bf16.mxu1 %vm3146_vm0, %v3145_v17  ;;  %vm1350_vm3 = vcmp.lt.s32.totalorder %v1331_v11, 1  ;;  %vm1352_vm4 = vcmp.lt.s32.totalorder %v1331_v11, 3  ;;  %vm1351_vm5 = vcmp.lt.s32.totalorder %v1331_v11, 2 }
  0xfb   : > { %v1345_v10 = vshrl.u32 %v3150_v9, %v1333_v6  ;;  %v1348_v15 = vshrl.u32 %v3151_v14, %v1333_v6 }
  0xfc   : > { %2671 = vmatpush3.bf16.msra.mxu0 %v2867_v18  ;;  %v3153_v18 = vmov 2475754826  }
  0xfd   : > { %2672 = vmatprep.subr.bf16.mxu0 %v3145_v17 }
 0x100   : > { %2673 = vmatpush3.bf16.msra.mxu0 %v2868_v19  ;;  %v1336_v19 = vshrl.u32 %v3153_v18, %v1333_v6 }
 0x101   : > { %2674 = vmatprep.subr.bf16.mxu0 %v3145_v17 }
 0x104   : > { %2675 = vmatpush3.bf16.msra.mxu0 %v2869_v20  ;;  %v1338_v20 = vshll.u32 %v3153_v18, %v1332_v5 }
 0x105   : > { %2676 = vmatprep.subr.bf16.mxu0 %v3145_v17 }
 0x108   : > { %2677 = vmatpush3.bf16.msra.mxu0 %v2870_v21  ;;  %v3154_v21 = vmov 2131351028  }
 0x109   : > { %2678 = vmatprep.subr.bf16.mxu0 %v3145_v17 }
 0x10c   : > { %2679 = vmatpush3.bf16.msra.mxu0 %v2871_v22  ;;  %v1339_v22 = vshrl.u32 %v3154_v21, %v1333_v6 }
 0x10d   : > { %2680 = vmatprep.subr.bf16.mxu0 %v3145_v17 }
 0x110   : > { %2681 = vmatpush3.bf16.msra.mxu0 %v2872_v23  ;;  %v1341_v23 = vshll.u32 %v3154_v21, %v1332_v5 }
 0x111   : > { %2682 = vmatprep.subr.bf16.mxu0 %v3145_v17  ;;  %v1335_v17 = vshll.u32 %v3152_v16, %v1332_v5 }
 0x114   : > { %2683 = vmatpush3.bf16.msra.mxu0 %v2873_v24  ;;  %v1342_v24 = vshrl.u32 %v3149_v7, %v1333_v6 }
 0x144   : > { %v1310_v61 = vpop.permute.xlu0 %1309 }
 0x1aa   : > { %v2585_v26 = vpop.f32.mrb[0].mxu0 }
 0x1ab   : > { %v2607_v27 = vpop.f32.mrb[0].mxu1  ;;  %v2586_v29 = vpop.f32.mrb[1].mxu0 }
 0x1ac   : > { %v2608_v30 = vpop.f32.mrb[1].mxu1  ;;  %v2587_v31 = vadd.f32 %v2586_v29, %v2585_v26  ;;  %v2588_v33 = vpop.f32.mrb[2].mxu0  ;;  %v1346_v26 = vor.u32 %v1345_v10, %v1344_v8  ;;  %v1337_v29 = vor.u32 %v1336_v19, %v1335_v17 }
 0x1ad   : > { %v2609_v32 = vadd.f32 %v2608_v30, %v2607_v27  ;;  %v2610_v34 = vpop.f32.mrb[2].mxu1  ;;  %v2589_v35 = vpop.f32.mrb[3].mxu0  ;;  %v1325_v27 = vand.u32 8388607, %v1318_v12  ;;  %v1340_v30 = vor.u32 %v1339_v22, %v1338_v20 }
 0x1ae   : > { %v2611_v36 = vpop.f32.mrb[3].mxu1  ;;  %v1065_v37 = vadd.f32 %v2587_v31, %v2412_v28  ;;  %v1349_v28 = vor.u32 %v1348_v15, %v1347_v13  ;;  %v1343_v31 = vor.u32 %v1342_v24, %v1341_v23 }
 0x1af   : > { %v1326_v33 = vor.u32 8388608, %v1325_v27  ;;  %v1358_v35 = vsel %vm1350_vm3, %v1337_v29, %v1340_v30 }
 0x1b0   : > { %v1105_v38 = vadd.f32 %v2609_v32, %v1065_v37  ;;  %v1359_v32 = vsel %vm1353_vm2, %v1346_v26, 920167782  ;;  %v1363_v34 = vsel %vm1353_vm2, %v1349_v28, 1326507024  ;;  %v1551_v37 = vld [vmem:[%s3659_s6] sm:$0xf] }
 0x1b1   : > { %v1360_v36 = vsel %vm1352_vm4, %v1343_v31, %v1359_v32 }
 0x1ca   : > { %v2629_v39 = vpop.f32.mrb[4].mxu0 }
 0x1cb   : > { %v2651_v40 = vpop.f32.mrb[4].mxu1  ;;  %v2630_v41 = vpop.f32.mrb[5].mxu0 }
 0x1cc   : > { %v2631_v42 = vadd.f32 %v2630_v41, %v2629_v39  ;;  %v2652_v43 = vpop.f32.mrb[5].mxu1  ;;  %v2632_v44 = vpop.f32.mrb[6].mxu0  ;;  %v1364_v39 = vsel %vm1352_vm4, %v1346_v26, %v1363_v34 }
 0x1cd   : > { %v2653_v45 = vadd.f32 %v2652_v43, %v2651_v40  ;;  %v2654_v46 = vpop.f32.mrb[6].mxu1  ;;  %v2633_v47 = vpop.f32.mrb[7].mxu0  ;;  %v1565_v40 = vsel %vm1563_vm6, %v1551_v37, 0  ;;  %v1361_v44 = vsel %vm1351_vm5, %v1358_v35, %v1360_v36  ;;  %v3542_v37 = vld [vmem:[#allocation10] sm:$0xff] }
 0x1ce   : > { %v1145_v48 = vadd.f32 %v2631_v42, %v1105_v38  ;;  %v2655_v49 = vpop.f32.mrb[7].mxu1  ;;  %v1362_v38 = vsel %vm1350_vm3, %v1340_v30, %v1343_v31  ;;  %v1366_v42 = vshll.u32 %v1326_v33, 8  ;;  %2689 = vmatpush3.bf16.msra.mxu1 %v1565_v40 }
 0x1d0   : > { %v1185_v50 = vadd.f32 %v2653_v45, %v1145_v48  ;;  %v1365_v45 = vsel %vm1351_vm5, %v1362_v38, %v1364_v39  ;;  %v3522_v46 = vmul.u32.u64.low %v1366_v42, %v1361_v44  ;;  %v3523_v47 = vmul.u32.u64.high %v1366_v42, %v1361_v44, %v3522_v46  ;;  %v3544_v38 = vld [vmem:[#allocation10 + $0x20] sm:$0xff]  ;;  %v1610_v39 = vld [vmem:[#allocation10 + $0x8] sm:$0xff] }
 0x1d1   : > { %v1334_v48 = vshrl.u32 %v3152_v16, %v1333_v6  ;;  %v2496_v40 = vcombine.low %v3542_v37, %v3544_v38 }
 0x1d2   : > { %v1190_v51 = vmax.f32 %v1185_v50, 0.0  ;;  %v3525_v49 = vmul.u32.u64.low %v1366_v42, %v1365_v45  ;;  %v3526_v50 = vmul.u32.u64.high %v1366_v42, %v1365_v45, %v3525_v49 }
 0x1d4   : > { %v1191_v52 = vpack.c.bf16 %v1190_v51, %v1190_v51  ;;  %v1355_v51 = vsel %vm1353_vm2, %v1343_v31, 2102212464  ;;  %vm1375_vm7 = vc.u32 %v3526_v50, %v3522_v46  ;;  %v1374_v5 = vadd.s32 %v3522_v46, %v3526_v50 }
 0x1d5   : > { %vm1546_vm2 = vcmask 15360  }
 0x1d6   : > { %2685 = vmatmul.mubr.bf16.vlgmr.msra.gmra.mrb[8].mxu0 %v1191_v52  ;;  %v1354_v52 = vsel %vm1350_vm3, %v1334_v48, %v1337_v29  ;;  %v1622_v48 = vld [vmem:[#allocation10 + $0x68] sm:$0xff]  ;;  %vm1548_vm3 = vcmask 31744  }
 0x2a9   : > { %v1297_v54 = vpop.f32.mrb[8].mxu0 }
 0x2aa   : > { %v3492_v55 = vadd.f32 %v2477_v53, %v1297_v54  ;;  %v2686_v56 = vpop.f32.mrb[9].mxu0  ;;  %v1356_v53 = vsel %vm1352_vm4, %v1340_v30, %v1355_v51  ;;  %vm1559_vm4 = vcmask 64512  }
 0x2ab   : > { %v1300_v57 = vpop.f32.mrb[10].mxu0  ;;  %v1357_v54 = vsel %vm1351_vm5, %v1354_v52, %v1356_v53 }
 0x2ac   : > { %1303 = vst [vmem:[%s3496_s10] sm:$0xff] %v3492_v55  ;;  %v1305_v58 = vmul.f32 0.5, %v3492_v55  ;;  %v2687_v59 = vpop.f32.mrb[11].mxu0  ;;  %v1373_v56 = vmul.u32 %v1366_v42, %v1357_v54  ;;  %v1614_v42 = vld [vmem:[#allocation10 + $0x28] sm:$0xff] }
 0x2ad   : > { %v2498_v46 = vcombine.low %v1610_v39, %v1614_v42 }
 0x2ae   : > { %v1306_v60 = vmul.f32 1.442695, %v1305_v58 }
 0x2b0   : > { %2874 = vpow2.f32 %v1306_v60 }
 0x2ba   : > { %v2875_v62 = vpop.eup %2874 }
 0x2bb   : > { %v1312_v63 = vmul.f32 %v2875_v62, %v1310_v61 }
 0x2bd   : > { %1314 = vrot.lane.b32.xlu0 %v1312_v63, %s3148_s12 }
 0x32f   : > { %v1315_v41 = vpop.permute.xlu0 %1314 }
 0x330   : > { %v3516_v43 = vadd.f32 %v1315_v41, %v3492_v55  ;;  %v1376_v55 = vadd.s32 1, %v3523_v47  ;;  %v2497_v41 = vcombine.high %v3542_v37, %v3544_v38  ;;  %v1657_v38 = vld [vmem:[#allocation10 + $0x180] sm:$0xff] }
 0x332   : > { %1526 = vrot.lane.b32.xlu1 %v3516_v43, %s3147_s23  ;;  %v1377_v57 = vsel %vm1375_vm7, %v1376_v55, %v3523_v47  ;;  %v2499_v47 = vcombine.high %v1610_v39, %v1614_v42  ;;  %2035 = vmatprep.subr.bf16.mxu1 %v2497_v41  ;;  %v1661_v39 = vld [vmem:[#allocation10 + $0x1a0] sm:$0xff] }
 0x333   : > { %v1378_v58 = vadd.s32 %v1377_v57, %v1373_v56  ;;  %v1626_v56 = vld [vmem:[#allocation10 + $0x88] sm:$0xff]  ;;  %v2545_v41 = vcombine.high %v1657_v38, %v1661_v39  ;;  %v2544_v42 = vcombine.low %v1657_v38, %v1661_v39 }
 0x334   : > { %2076 = vmatprep.subr.bf16.mxu0 %v2499_v47  ;;  %v1630_v57 = vld [vmem:[#allocation10 + $0xa8] sm:$0xff] }
 0x335   : > { %v1379_v59 = vadd.s32 536870912, %v1378_v58  ;;  %2077 = vmatpush1.bf16.msra.mxu0 %v2498_v46  ;;  %v1666_v46 = vld [vmem:[#allocation10 + $0x1c8] sm:$0xff] }
 0x336   : > { %1530 = vrot.lane.b32.xlu1 %v3516_v43, %s3155_s22  ;;  %s3030_s22 = scalar_lea.vmem %s3029_s27, 256 }
 0x337   : > { %v1380_v60 = vshrl.u32 %v1379_v59, 30 }
 0x339   : > { %v1381_v61 = vshll.u32 %v1380_v60, 30  ;;  %v1404_v19 = vsub.s32 4, %v1380_v60 }
 0x33b   : > { %v1382_v62 = vsub.s32 %v1378_v58, %v1381_v61  ;;  %v1405_v21 = vsel %vm1320_vm9, %v1404_v19, %v1380_v60  ;;  %v2515_v60 = vcombine.high %v1626_v56, %v1630_v57  ;;  %v2514_v61 = vcombine.low %v1626_v56, %v1630_v57  ;;  %v1616_v56 = vld [vmem:[#allocation10 + $0x38] sm:$0xff] }
 0x33c   : > { %v1407_v22 = vsel %vm1319_vm10, 0, %v1405_v21  ;;  %v3157_v57 = vmov 0  }
 0x33d   : > { %v1384_v63 = vsub.s32 0, %v1382_v62  ;;  %v1514_v23 = vadd.s32 3, %v1407_v22  ;;  %v1411_v27 = vand.u32 3, %v1407_v22  ;;  %2108 = vmatprep.mubr.bf16.mxu0 %v3157_v57 }
 0x33f   : > { %v2487_v0 = vmin.u32 %v1384_v63, %v1382_v62  ;;  %v1515_v28 = vand.u32 3, %v1514_v23  ;;  %vm1413_vm11 = vcmp.eq.s32.totalorder %v1411_v27, 0  ;;  %vm1416_vm12 = vcmp.eq.s32.totalorder %v1411_v27, 2  ;;  %v1638_v63 = vld [vmem:[#allocation10 + $0xe8] sm:$0xff]  ;;  %v1625_v23 = vld [vmem:[#allocation10 + $0x80] sm:$0xff] }
 0x340   : > { %vm1412_vm15 = vcmp.lt.s32.totalorder %v1411_v27, 2 }
 0x341   : > { %v1386_v1 = vclz %v2487_v0  ;;  %vm1517_vm13 = vcmp.eq.s32.totalorder %v1515_v28, 0  ;;  %vm1520_vm14 = vcmp.eq.s32.totalorder %v1515_v28, 2  ;;  %vm1516_vm0 = vcmp.lt.s32.totalorder %v1515_v28, 2  ;;  %v1633_v28 = vld [vmem:[#allocation10 + $0xc0] sm:$0xff] }
 0x343   : > { %v2488_v2 = vadd.s32 4294967294, %v1386_v1 }
 0x345   : > { %vm2489_vm8 = vcmp.lt.s32.totalorder %v2488_v2, 0 }
 0x346   : > { %v1389_v3 = vsel %vm2489_vm8, 0, %v2488_v2  ;;  %v1642_v2 = vld [vmem:[#allocation10 + $0x108] sm:$0xff] }
 0x347   : > { %v1394_v4 = vsub.s32 4294967266, %v1389_v3  ;;  %v1390_v6 = vsub.s32 32, %v1389_v3  ;;  %v1391_v8 = vshll.u32 %v1382_v62, %v1389_v3  ;;  %v1634_v62 = vld [vmem:[#allocation10 + $0xc8] sm:$0xff] }
 0x348   : > { %v2523_v0 = vcombine.high %v1634_v62, %v1638_v63  ;;  %v2522_v1 = vcombine.low %v1634_v62, %v1638_v63  ;;  %v1646_v3 = vld [vmem:[#allocation10 + $0x128] sm:$0xff] }
 0x349   : > { %v1395_v7 = vadd.s32 127, %v1394_v4  ;;  %v1392_v9 = vshrl.u32 %v1374_v5, %v1390_v6  ;;  %v2531_v4 = vcombine.high %v1642_v2, %v1646_v3  ;;  %v2530_v5 = vcombine.low %v1642_v2, %v1646_v3  ;;  %v1650_v6 = vld [vmem:[#allocation10 + $0x148] sm:$0xff]  ;;  %v1623_v2 = vld [vmem:[#allocation10 + $0x70] sm:$0xff]  ;;  %v1620_v3 = vld [vmem:[#allocation10 + $0x58] sm:$0xff] }
 0x34b   : > { %v1396_v10 = vshll.u32 %v1395_v7, 23  ;;  %v1393_v11 = vor.u32 %v1392_v9, %v1391_v8  ;;  %v1654_v7 = vld [vmem:[#allocation10 + $0x168] sm:$0xff] }
 0x34c   : > { %v2539_v8 = vcombine.high %v1650_v6, %v1654_v7  ;;  %v2538_v9 = vcombine.low %v1650_v6, %v1654_v7 }
 0x34d   : > { %v1397_v13 = vor.u32 4788187, %v1396_v10  ;;  %v1400_v15 = vcvt.s32.f32 %v1393_v11  ;;  %v1658_v10 = vld [vmem:[#allocation10 + $0x188] sm:$0xff] }
 0x34e   : > { %v1662_v11 = vld [vmem:[#allocation10 + $0x1a8] sm:$0xff] }
 0x34f   : > { %v1398_v14 = vand.u32 2147483647, %v1397_v13  ;;  %v2547_v13 = vcombine.high %v1658_v10, %v1662_v11 }
 0x351   : > { %v1401_v16 = vmul.f32 %v1400_v15, %v1398_v14  ;;  %v2546_v14 = vcombine.low %v1658_v10, %v1662_v11  ;;  %v1627_v10 = vld [vmem:[#allocation10 + $0x90] sm:$0xff] }
 0x352   : > { %v1631_v11 = vld [vmem:[#allocation10 + $0xb0] sm:$0xff] }
 0x353   : > { %v1402_v17 = vxor.u32 2147483648, %v1401_v16 }
 0x355   : > { %v1403_v18 = vsel %vm1320_vm9, %v1402_v17, %v1401_v16  ;;  %v1617_v17 = vld [vmem:[#allocation10 + $0x40] sm:$0xff] }
 0x356   : > { %v1406_v20 = vsel %vm1319_vm10, %v3482_v25, %v1403_v18  ;;  %v1618_v25 = vld [vmem:[#allocation10 + $0x48] sm:$0xff]  ;;  %v1621_v18 = vld [vmem:[#allocation10 + $0x60] sm:$0xff] }
 0x357   : > { %2876 = vcosq.f32 %v1406_v20  ;;  %v2507_v49 = vcombine.high %v1618_v25, %v1622_v48  ;;  %v2506_v55 = vcombine.low %v1618_v25, %v1622_v48  ;;  %v2505_v22 = vcombine.high %v1617_v17, %v1621_v18  ;;  %v1670_v25 = vld [vmem:[#allocation10 + $0x1e8] sm:$0xff] }
 0x358   : > { %2878 = vsinq.f32 %v1406_v20 }
 0x359   : > { %2078 = vmatprep.subr.bf16.mxu0 %v2507_v49  ;;  %v2554_v49 = vcombine.low %v1666_v46, %v1670_v25 }
 0x35a   : > { %2079 = vmatpush1.bf16.msra.mxu0 %v2506_v55 }
 0x35b   : > { %2080 = vmatprep.subr.bf16.mxu0 %v2515_v60  ;;  %v2494_v60 = vld [vmem:[%s3660_s7] ss:$0 sm:$0xff] }
 0x35e   : > { %2081 = vmatpush1.bf16.msra.mxu0 %v2514_v61 }
 0x35f   : > { %2082 = vmatprep.subr.bf16.mxu0 %v2523_v0  ;;  %v1619_v0 = vld [vmem:[#allocation10 + $0x50] sm:$0xff] }
 0x361   : > { %v2877_v24 = vpop.eup %2876 }
 0x362   : > { %v2879_v26 = vpop.eup %2878  ;;  %v1417_v30 = vxor.u32 2147483648, %v2877_v24  ;;  %2083 = vmatpush1.bf16.msra.mxu0 %v2522_v1 }
 0x363   : > { %v1414_v29 = vxor.u32 2147483648, %v2879_v26  ;;  %2084 = vmatprep.subr.bf16.mxu0 %v2531_v4  ;;  %v1624_v4 = vld [vmem:[#allocation10 + $0x78] sm:$0xff] }
 0x364   : > { %v1418_v31 = vsel %vm1416_vm12, %v1417_v30, %v2879_v26  ;;  %v1522_v33 = vsel %vm1520_vm14, %v1417_v30, %v2879_v26  ;;  %v2504_v26 = vcombine.low %v1617_v17, %v1621_v18  ;;  %v2517_v17 = vcombine.high %v1627_v10, %v1631_v11 }
 0x365   : > { %v1415_v12 = vsel %vm1413_vm11, %v2877_v24, %v1414_v29  ;;  %v1519_v32 = vsel %vm1517_vm13, %v2877_v24, %v1414_v29  ;;  %v1629_v24 = vld [vmem:[#allocation10 + $0xa0] sm:$0xff] }
 0x366   : > { %v1419_v34 = vsel %vm1412_vm15, %v1415_v12, %v1418_v31  ;;  %v1523_v35 = vsel %vm1516_vm0, %v1519_v32, %v1522_v33  ;;  %2085 = vmatpush1.bf16.msra.mxu0 %v2530_v5  ;;  %v2513_v27 = vcombine.high %v1625_v23, %v1629_v24  ;;  %v1637_v29 = vld [vmem:[#allocation10 + $0xe0] sm:$0xff]  ;;  %v2512_v30 = vcombine.low %v1625_v23, %v1629_v24 }
 0x367   : > { %v1420_v44 = vsel %vm1410_vm1, nan, %v1419_v34  ;;  %v1524_v45 = vsel %vm1410_vm1, nan, %v1523_v35  ;;  %2086 = vmatprep.subr.bf16.mxu0 %v2539_v8  ;;  %v2521_v12 = vcombine.high %v1633_v28, %v1637_v29  ;;  %v1645_v31 = vld [vmem:[#allocation10 + $0x120] sm:$0xff]  ;;  %v2520_v32 = vcombine.low %v1633_v28, %v1637_v29  ;;  %v1643_v28 = vld [vmem:[#allocation10 + $0x110] sm:$0xff] }
 0x368   : > { %v1649_v34 = vld [vmem:[#allocation10 + $0x140] sm:$0xff]  ;;  %v2509_v8 = vcombine.high %v1619_v0, %v1623_v2  ;;  %v2516_v23 = vcombine.low %v1627_v10, %v1631_v11  ;;  %v1647_v29 = vld [vmem:[#allocation10 + $0x130] sm:$0xff] }
 0x369   : > { %v1653_v35 = vld [vmem:[#allocation10 + $0x160] sm:$0xff]  ;;  %v2532_v38 = vcombine.low %v1643_v28, %v1647_v29 }
 0x36a   : > { %2087 = vmatpush1.bf16.msra.mxu0 %v2538_v9  ;;  %v2537_v37 = vcombine.high %v1649_v34, %v1653_v35  ;;  %v2511_v9 = vcombine.high %v1620_v3, %v1624_v4 }
 0x36b   : > { %2088 = vmatprep.subr.bf16.mxu0 %v2547_v13  ;;  %v1628_v13 = vld [vmem:[#allocation10 + $0x98] sm:$0xff] }
 0x36e   : > { %2089 = vmatpush1.bf16.msra.mxu0 %v2546_v14  ;;  %v1632_v14 = vld [vmem:[#allocation10 + $0xb8] sm:$0xff] }
 0x36f   : > { %v2519_v18 = vcombine.high %v1628_v13, %v1632_v14  ;;  %v2518_v24 = vcombine.low %v1628_v13, %v1632_v14 }
 0x3a4   : > { %v1527_v36 = vpop.permute.xlu1 %1526 }
 0x3a5   : > { %v1529_v51 = vmul.f32 %v1527_v36, %v1420_v44  ;;  %v1535_v52 = vmul.f32 %v1527_v36, %v1524_v45 }
 0x3a8   : > { %v1531_v50 = vpop.permute.xlu1 %1530 }
 0x3a9   : > { %v1533_v53 = vmul.f32 %v1531_v50, %v1524_v45  ;;  %v1536_v54 = vmul.f32 %v1531_v50, %v1420_v44  ;;  %v1665_v44 = vld [vmem:[#allocation10 + $0x1c0] sm:$0xff]  ;;  %v2555_v50 = vcombine.high %v1666_v46, %v1670_v25  ;;  %v1664_v46 = vld [vmem:[#allocation10 + $0x1b8] sm:$0xff] }
 0x3aa   : > { %v1669_v45 = vld [vmem:[#allocation10 + $0x1e0] sm:$0xff] }
 0x3ab   : > { %v1534_v58 = vsub.f32 %v1529_v51, %v1533_v53  ;;  %v1537_v59 = vadd.f32 %v1536_v54, %v1535_v52  ;;  %v2553_v47 = vcombine.high %v1665_v44, %v1669_v45  ;;  %v2552_v48 = vcombine.low %v1665_v44, %v1669_v45  ;;  %2090 = vmatprep.subr.bf16.mxu0 %v2555_v50  ;;  %v1611_v51 = vld [vmem:[#allocation10 + $0x10] sm:$0xff]  ;;  %v1612_v53 = vld [vmem:[#allocation10 + $0x18] sm:$0xff] }
 0x3ac   : > { %v1615_v52 = vld [vmem:[#allocation10 + $0x30] sm:$0xff]  ;;  %2091 = vmatpush1.bf16.msra.mxu0 %v2554_v49  ;;  %v1660_v45 = vld [vmem:[#allocation10 + $0x198] sm:$0xff] }
 0x3ad   : > { %1543 = vrot.lane.b32.xlu1 %v1537_v59, %s3156_s14  ;;  %1539 = vrot.lane.b32.xlu0 %v1534_v58, %s3148_s12  ;;  %v2500_v54 = vcombine.low %v1611_v51, %v1615_v52  ;;  %v2501_v55 = vcombine.high %v1611_v51, %v1615_v52  ;;  %v2502_v58 = vcombine.low %v1612_v53, %v1616_v56  ;;  %v1663_v44 = vld [vmem:[#allocation10 + $0x1b0] sm:$0xff]  ;;  %v1668_v52 = vld [vmem:[#allocation10 + $0x1d8] sm:$0xff]  ;;  %s3024_s12 = scalar_lea.vmem %s2241_s15, 128 }
 0x3ae   : > { %v2503_v59 = vcombine.high %v1612_v53, %v1616_v56  ;;  %v2551_v49 = vcombine.high %v1660_v45, %v1664_v46  ;;  %v1667_v50 = vld [vmem:[#allocation10 + $0x1d0] sm:$0xff]  ;;  %v1672_v53 = vld [vmem:[#allocation10 + $0x1f8] sm:$0xff]  ;;  %p3025_p12 = scmp.ne.s32.totalorder %s2241_s15, %s3024_s12  ;;  %p3032_p8 = scmp.lt.s32.totalorder %s3030_s22, %s3024_s12 }
 0x3af   : > { %v1671_v51 = vld [vmem:[#allocation10 + $0x1f0] sm:$0xff] }
 0x3b0   : > { %2158 = vmatprep.subr.bf16.mxu0 %v2503_v59  ;;  %v2557_v56 = vcombine.high %v1667_v50, %v1671_v51  ;;  %v2558_v59 = vcombine.low %v1668_v52, %v1672_v53  ;;  %p3026_p1 = pnand %p3025_p12, %p3698_p2  ;;  %p3033_p6 = por %p3032_p8, %p3031_p0 }
 0x3b2   : > { %p3027_p4 = pneg %p3026_p1 }
 0x3b4   : > { %p3034_p10 = pnand %p3033_p6, %p3027_p4 }
 0x41f   : > { %v1544_v15 = vpop.permute.xlu1 %1543  ;;  %v1540_v16 = vpop.permute.xlu0 %1539 }
 0x420   : > { %v1547_v19 = vsel %vm1546_vm2, %v1540_v16, %v1544_v15  ;;  %v2508_v15 = vcombine.low %v1619_v0, %v1623_v2  ;;  %v2510_v16 = vcombine.low %v1620_v3, %v1624_v4 }
 0x421   : > { %v1549_v20 = vsel %vm1548_vm3, %v1547_v19, %v3516_v43  ;;  %v1641_v43 = vld [vmem:[#allocation10 + $0x100] sm:$0xff]  ;;  %v1635_v19 = vld [vmem:[#allocation10 + $0xd0] sm:$0xff] }
 0x422   : > { %v1550_v21 = vpack.c.bf16 %v1549_v20, %v1549_v20  ;;  %v2529_v33 = vcombine.high %v1641_v43, %v1645_v31  ;;  %v2528_v36 = vcombine.low %v1641_v43, %v1645_v31  ;;  %v1639_v20 = vld [vmem:[#allocation10 + $0xf0] sm:$0xff] }
 0x423   : > { %v2524_v43 = vcombine.low %v1635_v19, %v1639_v20 }
 0x424   : > { %2691 = vmatmul.mubr.msk.bf16.vlgmr.msra.gmra.mrb[8].mxu1 %vm1559_vm4, %v1550_v21  ;;  %v1636_v21 = vld [vmem:[#allocation10 + $0xd8] sm:$0xff] }
 0x425   : > { %2036 = vmatpush1.bf16.msra.mxu1 %v2496_v40  ;;  %v2536_v40 = vcombine.low %v1649_v34, %v1653_v35  ;;  %2067 = vmatprep.mubr.bf16.mxu1 %v3157_v57  ;;  %v1651_v34 = vld [vmem:[#allocation10 + $0x150] sm:$0xff] }
 0x426   : > { %2037 = vmatprep.subr.bf16.mxu1 %v2505_v22  ;;  %v1640_v22 = vld [vmem:[#allocation10 + $0xf8] sm:$0xff]  ;;  %v1655_v35 = vld [vmem:[#allocation10 + $0x170] sm:$0xff] }
 0x427   : > { %v2526_v31 = vcombine.low %v1636_v21, %v1640_v22 }
 0x429   : > { %2038 = vmatpush1.bf16.msra.mxu1 %v2504_v26  ;;  %v2525_v26 = vcombine.high %v1635_v19, %v1639_v20 }
 0x42a   : > { %2039 = vmatprep.subr.bf16.mxu1 %v2513_v27  ;;  %v2527_v27 = vcombine.high %v1636_v21, %v1640_v22 }
 0x42d   : > { %2040 = vmatpush1.bf16.msra.mxu1 %v2512_v30  ;;  %v1644_v30 = vld [vmem:[#allocation10 + $0x118] sm:$0xff] }
 0x42e   : > { %2041 = vmatprep.subr.bf16.mxu1 %v2521_v12  ;;  %v1648_v12 = vld [vmem:[#allocation10 + $0x138] sm:$0xff] }
 0x42f   : > { %v2534_v39 = vcombine.low %v1644_v30, %v1648_v12 }
 0x431   : > { %2042 = vmatpush1.bf16.msra.mxu1 %v2520_v32  ;;  %v2533_v32 = vcombine.high %v1643_v28, %v1647_v29 }
 0x432   : > { %2043 = vmatprep.subr.bf16.mxu1 %v2529_v33  ;;  %v2535_v33 = vcombine.high %v1644_v30, %v1648_v12 }
 0x435   : > { %2044 = vmatpush1.bf16.msra.mxu1 %v2528_v36  ;;  %v1652_v36 = vld [vmem:[#allocation10 + $0x158] sm:$0xff] }
 0x436   : > { %2045 = vmatprep.subr.bf16.mxu1 %v2537_v37  ;;  %v1656_v37 = vld [vmem:[#allocation10 + $0x178] sm:$0xff] }
 0x437   : > { %v2542_v25 = vcombine.low %v1652_v36, %v1656_v37 }
 0x439   : > { %2046 = vmatpush1.bf16.msra.mxu1 %v2536_v40  ;;  %v2541_v40 = vcombine.high %v1651_v34, %v1655_v35 }
 0x43a   : > { %2047 = vmatprep.subr.bf16.mxu1 %v2545_v41  ;;  %v2543_v41 = vcombine.high %v1652_v36, %v1656_v37 }
 0x43d   : > { %2048 = vmatpush1.bf16.msra.mxu1 %v2544_v42  ;;  %v1659_v42 = vld [vmem:[#allocation10 + $0x190] sm:$0xff] }
 0x43e   : > { %2049 = vmatprep.subr.bf16.mxu1 %v2553_v47  ;;  %v2540_v47 = vcombine.low %v1651_v34, %v1655_v35 }
 0x441   : > { %2050 = vmatpush1.bf16.msra.mxu1 %v2552_v48  ;;  %v2549_v48 = vcombine.high %v1659_v42, %v1663_v44 }
 0x442   : > { %2117 = vmatprep.subr.bf16.mxu1 %v2501_v55  ;;  %v2550_v55 = vcombine.low %v1660_v45, %v1664_v46 }
 0x4f7   : > { %v1601_v61 = vpop.f32.mrb[8].mxu1 }
 0x4f8   : > { %v1602_v62 = vadd.f32 %v2494_v60, %v1601_v61  ;;  %v2692_v63 = vpop.f32.mrb[9].mxu1 }
 0x4f9   : > { %v1604_v1 = vpop.f32.mrb[10].mxu1 }
 0x4fa   : > { %v1607_v5 = vmax.f32 %v1602_v62, 0.0  ;;  %v2693_v6 = vpop.f32.mrb[11].mxu1 }
 0x4fc   : > { %v3558_v7 = vpack.c.bf16 %v1607_v5, %v1607_v5 }
 0x4fe   : > { %2068 = vmatmul.mubr.bf16.vlgmr.msra.gmra.mrb[12].mxu1 %v3558_v7  ;;  %2109 = vmatmul.mubr.bf16.vlgmr.msra.gmra.mrb[12].mxu0 %v3558_v7 }
 0x4ff   : > { %2118 = vmatpush1.bf16.msra.mxu1 %v2500_v54  ;;  %2159 = vmatpush1.bf16.msra.mxu0 %v2502_v58  ;;  %v2548_v54 = vcombine.low %v1659_v42, %v1663_v44  ;;  %v2556_v58 = vcombine.low %v1667_v50, %v1671_v51 }
 0x500   : > { %2119 = vmatprep.subr.bf16.mxu1 %v2509_v8  ;;  %2160 = vmatprep.subr.bf16.mxu0 %v2511_v9 }
 0x501   : > { %2149 = vmatprep.mubr.bf16.mxu1 %v3157_v57  ;;  %2190 = vmatprep.mubr.bf16.mxu0 %v3157_v57  ;;  %v2559_v57 = vcombine.high %v1668_v52, %v1672_v53 }
 0x503   : > { %2120 = vmatpush1.bf16.msra.mxu1 %v2508_v15  ;;  %2161 = vmatpush1.bf16.msra.mxu0 %v2510_v16 }
 0x504   : > { %2121 = vmatprep.subr.bf16.mxu1 %v2517_v17  ;;  %2162 = vmatprep.subr.bf16.mxu0 %v2519_v18 }
 0x507   : > { %2122 = vmatpush1.bf16.msra.mxu1 %v2516_v23  ;;  %2163 = vmatpush1.bf16.msra.mxu0 %v2518_v24 }
 0x508   : > { %2123 = vmatprep.subr.bf16.mxu1 %v2525_v26  ;;  %2164 = vmatprep.subr.bf16.mxu0 %v2527_v27 }
 0x50b   : > { %2124 = vmatpush1.bf16.msra.mxu1 %v2524_v43  ;;  %2165 = vmatpush1.bf16.msra.mxu0 %v2526_v31 }
 0x50c   : > { %2125 = vmatprep.subr.bf16.mxu1 %v2533_v32  ;;  %2166 = vmatprep.subr.bf16.mxu0 %v2535_v33 }
 0x50f   : > { %2126 = vmatpush1.bf16.msra.mxu1 %v2532_v38  ;;  %2167 = vmatpush1.bf16.msra.mxu0 %v2534_v39 }
 0x510   : > { %2127 = vmatprep.subr.bf16.mxu1 %v2541_v40  ;;  %2168 = vmatprep.subr.bf16.mxu0 %v2543_v41 }
 0x513   : > { %2128 = vmatpush1.bf16.msra.mxu1 %v2540_v47  ;;  %2169 = vmatpush1.bf16.msra.mxu0 %v2542_v25 }
 0x514   : > { %2129 = vmatprep.subr.bf16.mxu1 %v2549_v48  ;;  %2170 = vmatprep.subr.bf16.mxu0 %v2551_v49 }
 0x517   : > { %2130 = vmatpush1.bf16.msra.mxu1 %v2548_v54  ;;  %2171 = vmatpush1.bf16.msra.mxu0 %v2550_v55 }
 0x518   : > { %2131 = vmatprep.subr.bf16.mxu1 %v2557_v56  ;;  %2172 = vmatprep.subr.bf16.mxu0 %v2559_v57 }
 0x51b   : > { %2132 = vmatpush1.bf16.msra.mxu1 %v2556_v58  ;;  %2173 = vmatpush1.bf16.msra.mxu0 %v2558_v59 }
 0x51e   : > { %2150 = vmatmul.mubr.bf16.vlgmr.msra.gmra.mrb[16].mxu1 %v3558_v7  ;;  %2191 = vmatmul.mubr.bf16.vlgmr.msra.gmra.mrb[16].mxu0 %v3558_v7 }
 0x51f   : > { %3037 = shalt.err (!%p3034_p10)
}
 0x520   : > { %s3038_s10 = scalar_lea.hbm %s3569_s16, 128  ;;  %s3042_s25 = scalar_lea.hbm %s3697_s30, 256 }
 0x521   : > { %p3039_p13 = scmp.ne.s32.totalorder %s3569_s16, %s3038_s10  ;;  %p3043_p9 = scmp.lt.u32.totalorder %s3569_s16, %s3697_s30 }
 0x522   : > { %p3044_p3 = scmp.lt.u32.totalorder %s3042_s25, %s3038_s10  ;;  %p3046_p12 = scmp.lt.u32.totalorder %s3038_s10, %s3569_s16 }
 0x523   : > { %p3040_p5 = pnand %p3039_p13, %p3698_p2 }
 0x524   : > { %p3045_p7 = por %p3044_p3, %p3043_p9 }
 0x525   : > { %p3041_p11 = pneg %p3040_p5 }
 0x526   : > { %p3047_p1 = por %p3046_p12, %p3045_p7 }
 0x528   : > { %p3048_p4 = pnand %p3047_p1, %p3041_p11 }
 0x52a   : > { %3051 = shalt.err (!%p3048_p4)
}
 0x52b   : > { %2715 = dma.vmem_to_hbm [thread:$0]  (%p3698_p2), %s2241_s15, 128, %s3569_s16, %s2213_s26   ;;  %v1675_v60 = vlaneseq }
 0x52c   : > { %s3699_s11 = sld [smem:[#allocation24_spill]]  ;;  %s3594_s15 = scalar_lea.vmem [#allocation11], %s2405_s29 }
 0x52d   : > { %v1676_v61 = vshrl.u32 %v1675_v60, 7  ;;  %s2568_s29 = sshll.u32 %s3241_s21, 10  ;;  %s2227_s16 = sshll.u32 %s3594_s15, 4  ;;  %s3607_s16 = int_to_ptr.vmem [resolvable:$true] %s2227_s16 }
 0x52e   : > { %s3700_s22 = sld [smem:[#allocation25_spill]]  ;;  %s2208_s21 = scalar_lea.sflag [#allocation4], %s3443_s2 }
 0x52f   : > { %v1677_v62 = vsub.s32 0, %v1676_v61  ;;  %v1685_v63 = vsub.s32 2, %v1676_v61  ;;  %v1681_v1 = vsub.s32 1, %v1676_v61  ;;  %v1689_v2 = vsub.s32 3, %v1676_v61  ;;  %s3052_s14 = scalar_lea.vmem %s3607_s16, 1024  ;;  %s3159_s0 = smov [#allocation11]  }
 0x530   : > { %v1693_v20 = vsub.s32 4, %v1676_v61  ;;  %v1701_v21 = vsub.s32 6, %v1676_v61  ;;  %v1697_v22 = vsub.s32 5, %v1676_v61  ;;  %v1705_v23 = vsub.s32 7, %v1676_v61  ;;  %p3053_p0 = scmp.ne.s32.totalorder %s3607_s16, %s3052_s14  ;;  %s3056_s25 = sshll.u32 %s3159_s0, 4  ;;  %s3057_s25 = int_to_ptr.vmem [resolvable:$false] %s3056_s25 }
 0x531   : > { %s3058_s24 = scalar_lea.vmem %s3057_s25, 2048  ;;  %p3059_p10 = scmp.lt.s32.totalorder %s3607_s16, %s3057_s25 }
 0x532   : > { %v1673_v0 = vld [vmem:[%s3699_s11] sm:$0xff]  ;;  %p3054_p8 = pnand %p3053_p0, %p3698_p2  ;;  %p3060_p13 = scmp.lt.s32.totalorder %s3058_s24, %s3052_s14 }
 0x533   : > { %v1678_v3 = vrot.slane %v1673_v0, %v1677_v62  ;;  %v1686_v4 = vrot.slane %v1673_v0, %v1685_v63  ;;  %v1682_v5 = vrot.slane %v1673_v0, %v1681_v1  ;;  %v1690_v6 = vrot.slane %v1673_v0, %v1689_v2 }
 0x534   : > { %v1694_v24 = vrot.slane %v1673_v0, %v1693_v20  ;;  %v1702_v26 = vrot.slane %v1673_v0, %v1701_v21  ;;  %v1698_v27 = vrot.slane %v1673_v0, %v1697_v22  ;;  %v1706_v28 = vrot.slane %v1673_v0, %v1705_v23  ;;  %s3605_s10 = scalar_lea.hbm %s3700_s22, %s2568_s29  ;;  %p3055_p6 = pneg %p3054_p8 }
 0x535   : > { %p3061_p5 = por %p3060_p13, %p3059_p10 }
 0x537   : > { %p3062_p11 = pnand %p3061_p5, %p3055_p6 }
 0x5d1   : > { %v2069_v7 = vpop.f32.mrb[12].mxu1  ;;  %v2110_v8 = vpop.f32.mrb[12].mxu0 }
 0x5d2   : > { %v2070_v9 = vadd.f32 %v2069_v7, %v1678_v3  ;;  %v2111_v10 = vadd.f32 %v2110_v8, %v1686_v4  ;;  %v2071_v11 = vpop.f32.mrb[13].mxu1  ;;  %v2112_v13 = vpop.f32.mrb[13].mxu0 }
 0x5d3   : > { %v2072_v14 = vadd.f32 %v2071_v11, %v1682_v5  ;;  %v2113_v15 = vadd.f32 %v2112_v13, %v1690_v6  ;;  %v2073_v16 = vpop.f32.mrb[14].mxu1  ;;  %v2114_v17 = vpop.f32.mrb[14].mxu0 }
 0x5d4   : > { %2199 = vst [vmem:[%s3594_s15] sm:$0xff] %v2070_v9  ;;  %2201 = vst [vmem:[%s3594_s15 + $0x10] sm:$0xff] %v2111_v10  ;;  %v2074_v18 = vpop.f32.mrb[15].mxu1  ;;  %v2115_v19 = vpop.f32.mrb[15].mxu0 }
 0x5d5   : > { %2200 = vst [vmem:[%s3594_s15 + $0x8] sm:$0xff] %v2072_v14  ;;  %2202 = vst [vmem:[%s3594_s15 + $0x18] sm:$0xff] %v2113_v15 }
 0x5f1   : > { %v2151_v29 = vpop.f32.mrb[16].mxu1  ;;  %v2192_v30 = vpop.f32.mrb[16].mxu0 }
 0x5f2   : > { %v2152_v12 = vadd.f32 %v2151_v29, %v1694_v24  ;;  %v2193_v43 = vadd.f32 %v2192_v30, %v1702_v26  ;;  %v2153_v31 = vpop.f32.mrb[17].mxu1  ;;  %v2194_v32 = vpop.f32.mrb[17].mxu0 }
 0x5f3   : > { %v2154_v33 = vadd.f32 %v2153_v31, %v1698_v27  ;;  %v2195_v34 = vadd.f32 %v2194_v32, %v1706_v28  ;;  %v2155_v35 = vpop.f32.mrb[18].mxu1  ;;  %v2196_v36 = vpop.f32.mrb[18].mxu0 }
 0x5f4   : > { %2203 = vst [vmem:[%s3594_s15 + $0x20] sm:$0xff] %v2152_v12  ;;  %2205 = vst [vmem:[%s3594_s15 + $0x30] sm:$0xff] %v2193_v43  ;;  %v2156_v37 = vpop.f32.mrb[19].mxu1  ;;  %v2197_v38 = vpop.f32.mrb[19].mxu0 }
 0x5f5   : > { %2204 = vst [vmem:[%s3594_s15 + $0x28] sm:$0xff] %v2154_v33  ;;  %2206 = vst [vmem:[%s3594_s15 + $0x38] sm:$0xff] %v2195_v34 }
 0x5f6   : > { %3065 = shalt.err (!%p3062_p11)
}
 0x5f7   : > { %s3066_s2 = scalar_lea.hbm %s3605_s10, 1024  ;;  %s3070_s12 = scalar_lea.hbm %s3700_s22, 2048 }
 0x5f8   : > { %p3067_p9 = scmp.ne.s32.totalorder %s3605_s10, %s3066_s2  ;;  %p3071_p12 = scmp.lt.u32.totalorder %s3605_s10, %s3700_s22 }
 0x5f9   : > { %p3072_p1 = scmp.lt.u32.totalorder %s3070_s12, %s3066_s2  ;;  %p3074_p0 = scmp.lt.u32.totalorder %s3066_s2, %s3605_s10 }
 0x5fa   : > { %p3068_p3 = pnand %p3067_p9, %p3698_p2 }
 0x5fb   : > { %p3073_p4 = por %p3072_p1, %p3071_p12 }
 0x5fc   : > { %p3069_p7 = pneg %p3068_p3 }
 0x5fd   : > { %p3075_p8 = por %p3074_p0, %p3073_p4 }
 0x5ff   : > { %p3076_p6 = pnand %p3075_p8, %p3069_p7 }
 0x601   : > { %3079 = shalt.err (!%p3076_p6)
}
 0x602   : > { %2714 = dma.vmem_to_hbm [thread:$0]  (%p3698_p2), %s3607_s16, 1024, %s3605_s10, %s2208_s21  }
 0x603 PF: > { %s3701_s29 = sld [smem:[#allocation20_spill]]  ;;  %s3702_s26 = sld [smem:[#allocation21_spill]] }
 0x604   : > { %p3704_p13 = scmp.ge.s32.totalorder %s3134_s20, 2 }
 0x609   : > { %s2252_s27 = sand.u32 1, %s3701_s29   ;;  %p3703_p10 = scmp.ne.s32.totalorder %s3702_s26, 0 }
 0x60a   : > { %s2253_s14 = scalar_lea.sflag [#allocation4], %s2252_s27 }
 0x60b   : > { %p2736_p5 = pnand %p3704_p13, %p3703_p10 }
 0x60d   : > { %3113 = dma.done.wait (!%p2736_p5), %s2253_s14, 1024  }
 0x60e   : > { %3115 = vsyncadd (!%p2736_p5), %s2253_s14, 4294966272  ;;  %s2262_s0 = scalar_lea.sflag [#allocation13], %s2252_s27 }
 0x60f   : > { %3117 = dma.done.wait (!%p2736_p5), %s2262_s0, 128  }
 0x610   : > { %3119 = vsyncadd (!%p2736_p5), %s2262_s0, 4294967168  ;;  %s3705_s28 = smov %s3361_s17  ;;  %p32_p2 = scmp.ge.s32.totalorder %s3351_s9, 4  }
 0x611   : > { %s3706_s17 = smov %s3126_s18  ;;  %s3707_s18 = smov %s3130_s19 }
 0x612   : > { %s3708_s19 = smov %s3705_s28  ;;  %s3709_s20 = smov %s3351_s9 }
 0x613   :  { %34 = sbr.rel (!%p32_p2) target bundleno = 16 (0x10), region = 147 }
 0x61a   :  { %2267 = vsyncpa [#allocation3], 1 }
 0x61b   :  { %2269 = vsyncpa [#allocation3 + $0x1], 1 }
 0x61c   :  { %2270 = vsyncpa [#allocation6], 1 }
 0x61d   :  { %2272 = vsyncpa [#allocation6 + $0x1], 1 }
 0x61e   :  { %2273 = vsyncpa [#allocation9], 1 }
 0x61f   :  { %2274 = vsyncpa [#allocation4], 1 }
 0x620   :  { %2276 = vsyncpa [#allocation4 + $0x1], 1 }
 0x621   :  { %2277 = vsyncpa [#allocation13], 1 }
 0x622   :  { %2279 = vsyncpa [#allocation13 + $0x1], 1 }

</bundles_post_ra>
